<compile_context>
chip_gen: v7x
topology: tpu7x:2x2x1
jax: 0.10.0
libtpu: 0.0.40
codegen_flags: <defaults>
</compile_context>

<pallas_src>
import functools
import math

import jax
import jax.numpy as jnp
from jax.experimental import pallas as pl
from jax.experimental.pallas import tpu as pltpu


# --------------------------------------------------------------------------
# Pallas kernel: one batch tile (default: the whole batch) per grid step.
# --------------------------------------------------------------------------
def layer_kernel(
    xb_ref,          # (nb, R, E)      block-major input, R = batch_tile * N rows
    bias_ref,        # (nb, R, R)      block-diagonal, pre-oriented 0/1 mask
    ng_ref, nbeta_ref,                   # (nb, 1, E)   pre-norm gamma/beta
    wqh_ref, bqh_ref,                    # (nb, H, E, dk) / (nb, H, 1, dk)
    wkh_ref, bkh_ref,
    wvh_ref, bvh_ref,
    png_ref, pnbeta_ref,                 # (nb, 1, E)   post-norm gamma/beta
    w1b_ref,                             # (nb, E, dh)  FCN layer-1, split per block
    b1_ref,                              # (1, dh)
    w2_ref,                              # (dh, Etot)
    b2_ref,                              # (1, Etot)
    o_ref,                               # (R, Etot)
    *, num_blocks, num_heads, eps,
):
    E = xb_ref.shape[2]
    H = num_heads
    dk = E // H
    inv_scale = 1.0 / math.sqrt(dk)

    ng, nbeta = ng_ref[...], nbeta_ref[...]
    png, pnbeta = png_ref[...], pnbeta_ref[...]
    b1, w2, b2 = b1_ref[...], w2_ref[...], b2_ref[...]

    def layernorm(v, gamma, beta):
        mu = jnp.mean(v, axis=-1, keepdims=True)
        var = jnp.mean((v - mu) ** 2, axis=-1, keepdims=True)     # biased, like torch
        return (v - mu) * jax.lax.rsqrt(var + eps) * gamma + beta

    h1 = None
    for i in range(num_blocks):                       # static unroll (nb is small)
        xi = xb_ref[i]                                # (R, E)  leading-dim view
        mi = bias_ref[i]                              # (R, R)  already oriented + block-diag

        xn = layernorm(xi, ng[i], nbeta[i])           # (R, E), R = B*N rows folded

        wq_i, bq_i = wqh_ref[i], bqh_ref[i]           # (H, E, dk), (H, 1, dk)
        wk_i, bk_i = wkh_ref[i], bkh_ref[i]
        wv_i, bv_i = wvh_ref[i], bvh_ref[i]

        # Per-head projections directly from per-head weights (no lane slicing),
        # stacked along a leading head axis.
        q_h = jnp.stack([jnp.dot(xn, wq_i[h], preferred_element_type=jnp.float32) + bq_i[h]
                         for h in range(H)], axis=0)  # (H, R, dk)
        k_h = jnp.stack([jnp.dot(xn, wk_i[h], preferred_element_type=jnp.float32) + bk_i[h]
                         for h in range(H)], axis=0)
        v_h = jnp.stack([jnp.dot(xn, wv_i[h], preferred_element_type=jnp.float32) + bv_i[h]
                         for h in range(H)], axis=0)

        # Batched (over heads) attention; batch separation is handled by the
        # block-diagonal mask, so rows span all batch elements at once.
        s = jnp.einsum('hqd,hkd->hqk', q_h, k_h,
                       preferred_element_type=jnp.float32) * inv_scale   # (H, R, R)
        s = jnp.where(mi[None, :, :] == 0.0, jnp.float32(-1e9), s)
        s = s - jnp.max(s, axis=-1, keepdims=True)
        p = jnp.exp(s)
        p = p * pl.reciprocal(jnp.sum(p, axis=-1, keepdims=True), approx=True)
        z_h = jnp.einsum('hqk,hkd->hqd', p, v_h,
                         preferred_element_type=jnp.float32)             # (H, R, dk)

        zi = jnp.concatenate([z_h[h] for h in range(H)], axis=-1)        # (R, E)

        # SubLayerBlock: residual with the *normed* input, then post-LayerNorm.
        zi = layernorm(zi + xn, png[i], pnbeta[i])

        # Outer residual + FCN layer-1, accumulated block-by-block (no Etot concat).
        ui = xi + zi
        contrib = jnp.dot(ui, w1b_ref[i], preferred_element_type=jnp.float32)
        h1 = contrib if h1 is None else h1 + contrib

    h1 = h1 + b1
    # exact GELU (erf), matching torch nn.GELU default
    h1 = 0.5 * h1 * (1.0 + jax.lax.erf(h1 * (1.0 / math.sqrt(2.0))))
    y = jnp.dot(h1, w2, preferred_element_type=jnp.float32) + b2
    o_ref[...] = y                                    # lane-dense (R, Etot) slab


# --------------------------------------------------------------------------
# Wrapper: host-side re-layout (free relative to the kernel) + pallas_call.
# --------------------------------------------------------------------------
def layer_forward(x, x_mask, params, *, num_blocks, num_heads, eps, batch_tile=None):
    B, N, Etot = x.shape
    E = Etot // num_blocks
    H = num_heads
    dk = E // H
    dh = params["w1"].shape[-1]
    directions = tuple((i + 1) % 2 for i in range(num_blocks))

    if batch_tile is None:
        batch_tile = B                     # collapse the grid: whole batch per step
    assert B % batch_tile == 0
    num_tiles = B // batch_tile
    R = batch_tile * N                     # rows per grid step

    # x: (B, N, nb*E) -> block-major (nb, B*N, E)
    xb = x.reshape(B, N, num_blocks, E).transpose(2, 0, 1, 3).reshape(num_blocks, B * N, E)

    # mask: (B, N, nb*N) -> (nb, B, N, N), pre-oriented (direction==0 -> transpose),
    # then expanded to a block-diagonal (nb, B*N, B*N) so batch folds into rows.
    mb = x_mask.reshape(B, N, num_blocks, N).transpose(2, 0, 1, 3)
    mb = jnp.stack([mb[i] if directions[i] == 1 else jnp.swapaxes(mb[i], -1, -2)
                    for i in range(num_blocks)], axis=0)
    eye_b = jnp.eye(B, dtype=x.dtype)
    bias = (mb[:, :, :, None, :] * eye_b[None, :, None, :, None]
            ).reshape(num_blocks, B * N, B * N)

    # Per-head Q/K/V weights: (nb, E, E) -> (nb, H, E, dk); biases -> (nb, H, 1, dk).
    def split_w(w):
        return w.reshape(num_blocks, E, H, dk).transpose(0, 2, 1, 3)

    def split_b(b):
        return b.reshape(num_blocks, H, 1, dk)

    wqh, wkh, wvh = split_w(params["wq"]), split_w(params["wk"]), split_w(params["wv"])
    bqh, bkh, bvh = split_b(params["bq"]), split_b(params["bk"]), split_b(params["bv"])

    ng = params["ng"].reshape(num_blocks, 1, E)
    nbeta = params["nbeta"].reshape(num_blocks, 1, E)
    png = params["png"].reshape(num_blocks, 1, E)
    pnbeta = params["pnbeta"].reshape(num_blocks, 1, E)
    w1b = params["w1"].reshape(num_blocks, E, dh)      # split layer-1 per block
    b1 = params["b1"].reshape(1, dh)
    w2 = params["w2"]
    b2 = params["b2"].reshape(1, Etot)

    param_list = [ng, nbeta, wqh, bqh, wkh, bkh, wvh, bvh,
                  png, pnbeta, w1b, b1, w2, b2]

    def full_spec(shape):
        nd = len(shape)
        return pl.BlockSpec(shape, lambda b, _nd=nd: (0,) * _nd)

    in_specs = (
        [pl.BlockSpec((num_blocks, R, E), lambda b: (0, b, 0)),
         pl.BlockSpec((num_blocks, R, R), lambda b: (0, b, b))]
        + [full_spec(p.shape) for p in param_list]
    )

    kernel = functools.partial(layer_kernel, num_blocks=num_blocks,
                               num_heads=num_heads, eps=eps)

    y_flat = pl.pallas_call(
        kernel,
        out_shape=jax.ShapeDtypeStruct((B * N, Etot), jnp.float32),
        grid=(num_tiles,),
        in_specs=in_specs,
        out_specs=pl.BlockSpec((R, Etot), lambda b: (b, 0)),
        compiler_params=pltpu.CompilerParams(dimension_semantics=("parallel",)),
    )(xb, bias, *param_list)

    return y_flat.reshape(B, N, Etot)


# --------------------------------------------------------------------------
# Pure-JAX reference (mirrors the PyTorch module in eval mode)
# --------------------------------------------------------------------------
def layer_reference(x, x_mask, p, *, num_blocks, num_heads, eps):
    B, N, Etot = x.shape
    E = Etot // num_blocks
    dk = E // num_heads
    directions = tuple((i + 1) % 2 for i in range(num_blocks))

    def ln(v, g, b):
        mu = jnp.mean(v, axis=-1, keepdims=True)
        var = jnp.mean((v - mu) ** 2, axis=-1, keepdims=True)
        return (v - mu) / jnp.sqrt(var + eps) * g + b

    z_parts = []
    for i in range(num_blocks):
        xi = x[..., i * E:(i + 1) * E]
        mi = x_mask[..., i * N:(i + 1) * N]
        if directions[i] == 0:
            mi = jnp.swapaxes(mi, -1, -2)
        xn = ln(xi, p["ng"][i], p["nbeta"][i])
        q = xn @ p["wq"][i] + p["bq"][i]
        k = xn @ p["wk"][i] + p["bk"][i]
        v = xn @ p["wv"][i] + p["bv"][i]
        q = q.reshape(B, N, num_heads, dk).transpose(0, 2, 1, 3)
        k = k.reshape(B, N, num_heads, dk).transpose(0, 2, 1, 3)
        v = v.reshape(B, N, num_heads, dk).transpose(0, 2, 1, 3)
        s = jnp.einsum("bhqd,bhkd->bhqk", q, k) / math.sqrt(dk)
        s = jnp.where(mi[:, None] == 0, -1e9, s)
        w = jax.nn.softmax(s, axis=-1)
        z = jnp.einsum("bhqk,bhkd->bhqd", w, v)
        z = z.transpose(0, 2, 1, 3).reshape(B, N, E)
        z = ln(z + xn, p["png"][i], p["pnbeta"][i])
        z_parts.append(z)
    z = jnp.concatenate(z_parts, axis=-1)
    u = x + z
    h = u @ p["w1"] + p["b1"]
    h = 0.5 * h * (1.0 + jax.lax.erf(h / math.sqrt(2.0)))
    return h @ p["w2"] + p["b2"]


# --------------------------------------------------------------------------
# Main
# --------------------------------------------------------------------------
if __name__ == "__main__":
    # Module hyperparameters (dim_qkv == dim_embed -> lt_end is None).
    num_blocks = 2
    dim_embed = 32
    num_heads = 4
    dim_hidden = 64
    eps = 1e-5

    B, N = 2, 8
    Etot = dim_embed * num_blocks

    key = jax.random.PRNGKey(0)
    keys = jax.random.split(key, 16)

    x = jax.random.normal(keys[0], (B, N, Etot), dtype=jnp.float32)
    mask = (jax.random.uniform(keys[1], (B, N, N * num_blocks)) > 0.3).astype(jnp.float32)
    # guarantee each row of every mask block has at least the diagonal set
    eye_tiled = jnp.tile(jnp.eye(N, dtype=jnp.float32), (1, num_blocks))
    x_mask = jnp.maximum(mask, eye_tiled[None])

    def w_init(k, shape, scale=0.05):
        return (scale * jax.random.normal(k, shape)).astype(jnp.float32)

    params = {
        "ng":     jnp.ones((num_blocks, dim_embed), jnp.float32),
        "nbeta":  jnp.zeros((num_blocks, dim_embed), jnp.float32),
        "wq":     w_init(keys[2], (num_blocks, dim_embed, dim_embed)),
        "bq":     w_init(keys[3], (num_blocks, dim_embed), 0.01),
        "wk":     w_init(keys[4], (num_blocks, dim_embed, dim_embed)),
        "bk":     w_init(keys[5], (num_blocks, dim_embed), 0.01),
        "wv":     w_init(keys[6], (num_blocks, dim_embed, dim_embed)),
        "bv":     w_init(keys[7], (num_blocks, dim_embed), 0.01),
        "png":    jnp.ones((num_blocks, dim_embed), jnp.float32),
        "pnbeta": jnp.zeros((num_blocks, dim_embed), jnp.float32),
        "w1":     w_init(keys[8], (Etot, dim_hidden)),
        "b1":     w_init(keys[9], (1, dim_hidden), 0.01),
        "w2":     w_init(keys[10], (dim_hidden, Etot)),
        "b2":     w_init(keys[11], (1, Etot), 0.01),
    }

    y = layer_forward(x, x_mask, params,
                      num_blocks=num_blocks, num_heads=num_heads, eps=eps)
    y = jax.block_until_ready(y)

    y_ref = layer_reference(x, x_mask, params,
                            num_blocks=num_blocks, num_heads=num_heads, eps=eps)
    y_ref = jax.block_until_ready(y_ref)

    assert y.shape == (B, N, Etot)
    assert jnp.max(jnp.abs(y - y_ref)) < 1e-3, float(jnp.max(jnp.abs(y - y_ref)))

    print("KERNEL_OK")
</pallas_src>

<mosaic_0001>
module attributes {stable_mosaic.version = 11 : i64} {
  func.func @layer_kernel(%arg0: i32, %arg1: memref<2x16x32xf32, #tpu.memory_space<vmem>>, %arg2: memref<2x16x16xf32, #tpu.memory_space<vmem>>, %arg3: memref<2x1x32xf32, #tpu.memory_space<vmem>>, %arg4: memref<2x1x32xf32, #tpu.memory_space<vmem>>, %arg5: memref<2x4x32x8xf32, #tpu.memory_space<vmem>>, %arg6: memref<2x4x1x8xf32, #tpu.memory_space<vmem>>, %arg7: memref<2x4x32x8xf32, #tpu.memory_space<vmem>>, %arg8: memref<2x4x1x8xf32, #tpu.memory_space<vmem>>, %arg9: memref<2x4x32x8xf32, #tpu.memory_space<vmem>>, %arg10: memref<2x4x1x8xf32, #tpu.memory_space<vmem>>, %arg11: memref<2x1x32xf32, #tpu.memory_space<vmem>>, %arg12: memref<2x1x32xf32, #tpu.memory_space<vmem>>, %arg13: memref<2x32x64xf32, #tpu.memory_space<vmem>>, %arg14: memref<1x64xf32, #tpu.memory_space<vmem>>, %arg15: memref<64x64xf32, #tpu.memory_space<vmem>>, %arg16: memref<1x64xf32, #tpu.memory_space<vmem>>, %arg17: memref<16x64xf32, #tpu.memory_space<vmem>>) attributes {dimension_semantics = [#tpu.dimension_semantics<parallel>], iteration_bounds = array<i64: 1>, scalar_prefetch = 0 : i64, scratch_operands = 0 : i64, tpu.core_type = #tpu.core_type<tc>, window_params = [{transform_indices = @transform_0, window_bounds = array<i64: 2, 16, 32>}, {transform_indices = @transform_1, window_bounds = array<i64: 2, 16, 16>}, {pipeline_mode = #tpu.pipeline_mode<synchronous>, transform_indices = @transform_2, window_bounds = array<i64: 2, 1, 32>}, {pipeline_mode = #tpu.pipeline_mode<synchronous>, transform_indices = @transform_3, window_bounds = array<i64: 2, 1, 32>}, {pipeline_mode = #tpu.pipeline_mode<synchronous>, transform_indices = @transform_4, window_bounds = array<i64: 2, 4, 32, 8>}, {pipeline_mode = #tpu.pipeline_mode<synchronous>, transform_indices = @transform_5, window_bounds = array<i64: 2, 4, 1, 8>}, {pipeline_mode = #tpu.pipeline_mode<synchronous>, transform_indices = @transform_6, window_bounds = array<i64: 2, 4, 32, 8>}, {pipeline_mode = #tpu.pipeline_mode<synchronous>, transform_indices = @transform_7, window_bounds = array<i64: 2, 4, 1, 8>}, {pipeline_mode = #tpu.pipeline_mode<synchronous>, transform_indices = @transform_8, window_bounds = array<i64: 2, 4, 32, 8>}, {pipeline_mode = #tpu.pipeline_mode<synchronous>, transform_indices = @transform_9, window_bounds = array<i64: 2, 4, 1, 8>}, {pipeline_mode = #tpu.pipeline_mode<synchronous>, transform_indices = @transform_10, window_bounds = array<i64: 2, 1, 32>}, {pipeline_mode = #tpu.pipeline_mode<synchronous>, transform_indices = @transform_11, window_bounds = array<i64: 2, 1, 32>}, {pipeline_mode = #tpu.pipeline_mode<synchronous>, transform_indices = @transform_12, window_bounds = array<i64: 2, 32, 64>}, {pipeline_mode = #tpu.pipeline_mode<synchronous>, transform_indices = @transform_13, window_bounds = array<i64: 1, 64>}, {pipeline_mode = #tpu.pipeline_mode<synchronous>, transform_indices = @transform_14, window_bounds = array<i64: 64, 64>}, {pipeline_mode = #tpu.pipeline_mode<synchronous>, transform_indices = @transform_15, window_bounds = array<i64: 1, 64>}, {transform_indices = @transform_16, window_bounds = array<i64: 16, 64>}]} {
    %c0 = arith.constant 0 : index
    %c0_0 = arith.constant 0 : index
    %c0_1 = arith.constant 0 : index
    %0 = vector.load %arg3[%c0, %c0_0, %c0_1] : memref<2x1x32xf32, #tpu.memory_space<vmem>>, vector<2x1x32xf32>
    %c0_2 = arith.constant 0 : index
    %c0_3 = arith.constant 0 : index
    %c0_4 = arith.constant 0 : index
    %1 = vector.load %arg4[%c0_2, %c0_3, %c0_4] : memref<2x1x32xf32, #tpu.memory_space<vmem>>, vector<2x1x32xf32>
    %c0_5 = arith.constant 0 : index
    %c0_6 = arith.constant 0 : index
    %c0_7 = arith.constant 0 : index
    %2 = vector.load %arg11[%c0_5, %c0_6, %c0_7] : memref<2x1x32xf32, #tpu.memory_space<vmem>>, vector<2x1x32xf32>
    %c0_8 = arith.constant 0 : index
    %c0_9 = arith.constant 0 : index
    %c0_10 = arith.constant 0 : index
    %3 = vector.load %arg12[%c0_8, %c0_9, %c0_10] : memref<2x1x32xf32, #tpu.memory_space<vmem>>, vector<2x1x32xf32>
    %c0_11 = arith.constant 0 : index
    %c0_12 = arith.constant 0 : index
    %4 = vector.load %arg14[%c0_11, %c0_12] : memref<1x64xf32, #tpu.memory_space<vmem>>, vector<1x64xf32>
    %c0_13 = arith.constant 0 : index
    %c0_14 = arith.constant 0 : index
    %5 = vector.load %arg15[%c0_13, %c0_14] : memref<64x64xf32, #tpu.memory_space<vmem>>, vector<64x64xf32>
    %c0_15 = arith.constant 0 : index
    %c0_16 = arith.constant 0 : index
    %6 = vector.load %arg16[%c0_15, %c0_16] : memref<1x64xf32, #tpu.memory_space<vmem>>, vector<1x64xf32>
    %c0_17 = arith.constant 0 : index
    %c0_18 = arith.constant 0 : index
    %c0_19 = arith.constant 0 : index
    %7 = vector.load %arg1[%c0_17, %c0_18, %c0_19] : memref<2x16x32xf32, #tpu.memory_space<vmem>>, vector<1x16x32xf32>
    %8 = vector.shape_cast %7 : vector<1x16x32xf32> to vector<16x32xf32>
    %c0_20 = arith.constant 0 : index
    %c0_21 = arith.constant 0 : index
    %c0_22 = arith.constant 0 : index
    %9 = vector.load %arg2[%c0_20, %c0_21, %c0_22] : memref<2x16x16xf32, #tpu.memory_space<vmem>>, vector<1x16x16xf32>
    %10 = vector.shape_cast %9 : vector<1x16x16xf32> to vector<16x16xf32>
    %11 = vector.extract_strided_slice %0 {offsets = [0, 0, 0], sizes = [1, 1, 32], strides = [1, 1, 1]} : vector<2x1x32xf32> to vector<1x1x32xf32>
    %12 = vector.shape_cast %11 : vector<1x1x32xf32> to vector<1x32xf32>
    %13 = vector.extract_strided_slice %1 {offsets = [0, 0, 0], sizes = [1, 1, 32], strides = [1, 1, 1]} : vector<2x1x32xf32> to vector<1x1x32xf32>
    %14 = vector.shape_cast %13 : vector<1x1x32xf32> to vector<1x32xf32>
    %cst = arith.constant dense<0.000000e+00> : vector<16xf32>
    %15 = vector.multi_reduction <add>, %8, %cst [1] : vector<16x32xf32> to vector<16xf32>
    %16 = vector.shape_cast %15 : vector<16xf32> to vector<16x1xf32>
    %cst_23 = arith.constant 3.200000e+01 : f32
    %17 = vector.broadcast %cst_23 : f32 to vector<16x1xf32>
    %18 = arith.divf %16, %17 : vector<16x1xf32>
    %19 = vector.broadcast %18 : vector<16x1xf32> to vector<16x32xf32>
    %20 = arith.subf %8, %19 : vector<16x32xf32>
    %21 = arith.mulf %20, %20 : vector<16x32xf32>
    %cst_24 = arith.constant dense<0.000000e+00> : vector<16xf32>
    %22 = vector.multi_reduction <add>, %21, %cst_24 [1] : vector<16x32xf32> to vector<16xf32>
    %23 = vector.shape_cast %22 : vector<16xf32> to vector<16x1xf32>
    %cst_25 = arith.constant 3.200000e+01 : f32
    %24 = vector.broadcast %cst_25 : f32 to vector<16x1xf32>
    %25 = arith.divf %23, %24 : vector<16x1xf32>
    %26 = vector.broadcast %18 : vector<16x1xf32> to vector<16x32xf32>
    %27 = arith.subf %8, %26 : vector<16x32xf32>
    %cst_26 = arith.constant 9.99999974E-6 : f32
    %28 = vector.broadcast %cst_26 : f32 to vector<16x1xf32>
    %29 = arith.addf %25, %28 : vector<16x1xf32>
    %30 = math.rsqrt %29 : vector<16x1xf32>
    %31 = vector.broadcast %30 : vector<16x1xf32> to vector<16x32xf32>
    %32 = arith.mulf %27, %31 : vector<16x32xf32>
    %33 = vector.broadcast %12 : vector<1x32xf32> to vector<16x32xf32>
    %34 = arith.mulf %32, %33 : vector<16x32xf32>
    %35 = vector.broadcast %14 : vector<1x32xf32> to vector<16x32xf32>
    %36 = arith.addf %34, %35 : vector<16x32xf32>
    %c0_27 = arith.constant 0 : index
    %c0_28 = arith.constant 0 : index
    %c0_29 = arith.constant 0 : index
    %c0_30 = arith.constant 0 : index
    %37 = vector.load %arg5[%c0_27, %c0_28, %c0_29, %c0_30] : memref<2x4x32x8xf32, #tpu.memory_space<vmem>>, vector<1x4x32x8xf32>
    %38 = vector.shape_cast %37 : vector<1x4x32x8xf32> to vector<4x32x8xf32>
    %c0_31 = arith.constant 0 : index
    %c0_32 = arith.constant 0 : index
    %c0_33 = arith.constant 0 : index
    %c0_34 = arith.constant 0 : index
    %39 = vector.load %arg6[%c0_31, %c0_32, %c0_33, %c0_34] : memref<2x4x1x8xf32, #tpu.memory_space<vmem>>, vector<1x4x1x8xf32>
    %40 = vector.shape_cast %39 : vector<1x4x1x8xf32> to vector<4x1x8xf32>
    %c0_35 = arith.constant 0 : index
    %c0_36 = arith.constant 0 : index
    %c0_37 = arith.constant 0 : index
    %c0_38 = arith.constant 0 : index
    %41 = vector.load %arg7[%c0_35, %c0_36, %c0_37, %c0_38] : memref<2x4x32x8xf32, #tpu.memory_space<vmem>>, vector<1x4x32x8xf32>
    %42 = vector.shape_cast %41 : vector<1x4x32x8xf32> to vector<4x32x8xf32>
    %c0_39 = arith.constant 0 : index
    %c0_40 = arith.constant 0 : index
    %c0_41 = arith.constant 0 : index
    %c0_42 = arith.constant 0 : index
    %43 = vector.load %arg8[%c0_39, %c0_40, %c0_41, %c0_42] : memref<2x4x1x8xf32, #tpu.memory_space<vmem>>, vector<1x4x1x8xf32>
    %44 = vector.shape_cast %43 : vector<1x4x1x8xf32> to vector<4x1x8xf32>
    %c0_43 = arith.constant 0 : index
    %c0_44 = arith.constant 0 : index
    %c0_45 = arith.constant 0 : index
    %c0_46 = arith.constant 0 : index
    %45 = vector.load %arg9[%c0_43, %c0_44, %c0_45, %c0_46] : memref<2x4x32x8xf32, #tpu.memory_space<vmem>>, vector<1x4x32x8xf32>
    %46 = vector.shape_cast %45 : vector<1x4x32x8xf32> to vector<4x32x8xf32>
    %c0_47 = arith.constant 0 : index
    %c0_48 = arith.constant 0 : index
    %c0_49 = arith.constant 0 : index
    %c0_50 = arith.constant 0 : index
    %47 = vector.load %arg10[%c0_47, %c0_48, %c0_49, %c0_50] : memref<2x4x1x8xf32, #tpu.memory_space<vmem>>, vector<1x4x1x8xf32>
    %48 = vector.shape_cast %47 : vector<1x4x1x8xf32> to vector<4x1x8xf32>
    %49 = vector.extract_strided_slice %38 {offsets = [0, 0, 0], sizes = [1, 32, 8], strides = [1, 1, 1]} : vector<4x32x8xf32> to vector<1x32x8xf32>
    %50 = vector.shape_cast %49 : vector<1x32x8xf32> to vector<32x8xf32>
    %cst_51 = arith.constant dense<0.000000e+00> : vector<16x8xf32>
    %51 = tpu.matmul %36, %50, %cst_51 {dimension_numbers = #tpu.dot_dimension_numbers<[1], [0], [0], [1], [0, 0, 1, 1], [], []>} : vector<16x32xf32>, vector<32x8xf32>, vector<16x8xf32> -> vector<16x8xf32>
    %52 = vector.extract_strided_slice %40 {offsets = [0, 0, 0], sizes = [1, 1, 8], strides = [1, 1, 1]} : vector<4x1x8xf32> to vector<1x1x8xf32>
    %53 = vector.shape_cast %52 : vector<1x1x8xf32> to vector<1x8xf32>
    %54 = vector.broadcast %53 : vector<1x8xf32> to vector<16x8xf32>
    %55 = arith.addf %51, %54 : vector<16x8xf32>
    %56 = vector.extract_strided_slice %38 {offsets = [1, 0, 0], sizes = [1, 32, 8], strides = [1, 1, 1]} : vector<4x32x8xf32> to vector<1x32x8xf32>
    %57 = vector.shape_cast %56 : vector<1x32x8xf32> to vector<32x8xf32>
    %cst_52 = arith.constant dense<0.000000e+00> : vector<16x8xf32>
    %58 = tpu.matmul %36, %57, %cst_52 {dimension_numbers = #tpu.dot_dimension_numbers<[1], [0], [0], [1], [0, 0, 1, 1], [], []>} : vector<16x32xf32>, vector<32x8xf32>, vector<16x8xf32> -> vector<16x8xf32>
    %59 = vector.extract_strided_slice %40 {offsets = [1, 0, 0], sizes = [1, 1, 8], strides = [1, 1, 1]} : vector<4x1x8xf32> to vector<1x1x8xf32>
    %60 = vector.shape_cast %59 : vector<1x1x8xf32> to vector<1x8xf32>
    %61 = vector.broadcast %60 : vector<1x8xf32> to vector<16x8xf32>
    %62 = arith.addf %58, %61 : vector<16x8xf32>
    %63 = vector.extract_strided_slice %38 {offsets = [2, 0, 0], sizes = [1, 32, 8], strides = [1, 1, 1]} : vector<4x32x8xf32> to vector<1x32x8xf32>
    %64 = vector.shape_cast %63 : vector<1x32x8xf32> to vector<32x8xf32>
    %cst_53 = arith.constant dense<0.000000e+00> : vector<16x8xf32>
    %65 = tpu.matmul %36, %64, %cst_53 {dimension_numbers = #tpu.dot_dimension_numbers<[1], [0], [0], [1], [0, 0, 1, 1], [], []>} : vector<16x32xf32>, vector<32x8xf32>, vector<16x8xf32> -> vector<16x8xf32>
    %66 = vector.extract_strided_slice %40 {offsets = [2, 0, 0], sizes = [1, 1, 8], strides = [1, 1, 1]} : vector<4x1x8xf32> to vector<1x1x8xf32>
    %67 = vector.shape_cast %66 : vector<1x1x8xf32> to vector<1x8xf32>
    %68 = vector.broadcast %67 : vector<1x8xf32> to vector<16x8xf32>
    %69 = arith.addf %65, %68 : vector<16x8xf32>
    %70 = vector.extract_strided_slice %38 {offsets = [3, 0, 0], sizes = [1, 32, 8], strides = [1, 1, 1]} : vector<4x32x8xf32> to vector<1x32x8xf32>
    %71 = vector.shape_cast %70 : vector<1x32x8xf32> to vector<32x8xf32>
    %cst_54 = arith.constant dense<0.000000e+00> : vector<16x8xf32>
    %72 = tpu.matmul %36, %71, %cst_54 {dimension_numbers = #tpu.dot_dimension_numbers<[1], [0], [0], [1], [0, 0, 1, 1], [], []>} : vector<16x32xf32>, vector<32x8xf32>, vector<16x8xf32> -> vector<16x8xf32>
    %73 = vector.extract_strided_slice %40 {offsets = [3, 0, 0], sizes = [1, 1, 8], strides = [1, 1, 1]} : vector<4x1x8xf32> to vector<1x1x8xf32>
    %74 = vector.shape_cast %73 : vector<1x1x8xf32> to vector<1x8xf32>
    %75 = vector.broadcast %74 : vector<1x8xf32> to vector<16x8xf32>
    %76 = arith.addf %72, %75 : vector<16x8xf32>
    %77 = vector.shape_cast %55 : vector<16x8xf32> to vector<1x16x8xf32>
    %78 = vector.shape_cast %62 : vector<16x8xf32> to vector<1x16x8xf32>
    %79 = vector.shape_cast %69 : vector<16x8xf32> to vector<1x16x8xf32>
    %80 = vector.shape_cast %76 : vector<16x8xf32> to vector<1x16x8xf32>
    %81 = tpu.concatenate %77, %78, %79, %80 in 0 : vector<1x16x8xf32>, vector<1x16x8xf32>, vector<1x16x8xf32>, vector<1x16x8xf32> -> vector<4x16x8xf32>
    %82 = vector.extract_strided_slice %42 {offsets = [0, 0, 0], sizes = [1, 32, 8], strides = [1, 1, 1]} : vector<4x32x8xf32> to vector<1x32x8xf32>
    %83 = vector.shape_cast %82 : vector<1x32x8xf32> to vector<32x8xf32>
    %cst_55 = arith.constant dense<0.000000e+00> : vector<16x8xf32>
    %84 = tpu.matmul %36, %83, %cst_55 {dimension_numbers = #tpu.dot_dimension_numbers<[1], [0], [0], [1], [0, 0, 1, 1], [], []>} : vector<16x32xf32>, vector<32x8xf32>, vector<16x8xf32> -> vector<16x8xf32>
    %85 = vector.extract_strided_slice %44 {offsets = [0, 0, 0], sizes = [1, 1, 8], strides = [1, 1, 1]} : vector<4x1x8xf32> to vector<1x1x8xf32>
    %86 = vector.shape_cast %85 : vector<1x1x8xf32> to vector<1x8xf32>
    %87 = vector.broadcast %86 : vector<1x8xf32> to vector<16x8xf32>
    %88 = arith.addf %84, %87 : vector<16x8xf32>
    %89 = vector.extract_strided_slice %42 {offsets = [1, 0, 0], sizes = [1, 32, 8], strides = [1, 1, 1]} : vector<4x32x8xf32> to vector<1x32x8xf32>
    %90 = vector.shape_cast %89 : vector<1x32x8xf32> to vector<32x8xf32>
    %cst_56 = arith.constant dense<0.000000e+00> : vector<16x8xf32>
    %91 = tpu.matmul %36, %90, %cst_56 {dimension_numbers = #tpu.dot_dimension_numbers<[1], [0], [0], [1], [0, 0, 1, 1], [], []>} : vector<16x32xf32>, vector<32x8xf32>, vector<16x8xf32> -> vector<16x8xf32>
    %92 = vector.extract_strided_slice %44 {offsets = [1, 0, 0], sizes = [1, 1, 8], strides = [1, 1, 1]} : vector<4x1x8xf32> to vector<1x1x8xf32>
    %93 = vector.shape_cast %92 : vector<1x1x8xf32> to vector<1x8xf32>
    %94 = vector.broadcast %93 : vector<1x8xf32> to vector<16x8xf32>
    %95 = arith.addf %91, %94 : vector<16x8xf32>
    %96 = vector.extract_strided_slice %42 {offsets = [2, 0, 0], sizes = [1, 32, 8], strides = [1, 1, 1]} : vector<4x32x8xf32> to vector<1x32x8xf32>
    %97 = vector.shape_cast %96 : vector<1x32x8xf32> to vector<32x8xf32>
    %cst_57 = arith.constant dense<0.000000e+00> : vector<16x8xf32>
    %98 = tpu.matmul %36, %97, %cst_57 {dimension_numbers = #tpu.dot_dimension_numbers<[1], [0], [0], [1], [0, 0, 1, 1], [], []>} : vector<16x32xf32>, vector<32x8xf32>, vector<16x8xf32> -> vector<16x8xf32>
    %99 = vector.extract_strided_slice %44 {offsets = [2, 0, 0], sizes = [1, 1, 8], strides = [1, 1, 1]} : vector<4x1x8xf32> to vector<1x1x8xf32>
    %100 = vector.shape_cast %99 : vector<1x1x8xf32> to vector<1x8xf32>
    %101 = vector.broadcast %100 : vector<1x8xf32> to vector<16x8xf32>
    %102 = arith.addf %98, %101 : vector<16x8xf32>
    %103 = vector.extract_strided_slice %42 {offsets = [3, 0, 0], sizes = [1, 32, 8], strides = [1, 1, 1]} : vector<4x32x8xf32> to vector<1x32x8xf32>
    %104 = vector.shape_cast %103 : vector<1x32x8xf32> to vector<32x8xf32>
    %cst_58 = arith.constant dense<0.000000e+00> : vector<16x8xf32>
    %105 = tpu.matmul %36, %104, %cst_58 {dimension_numbers = #tpu.dot_dimension_numbers<[1], [0], [0], [1], [0, 0, 1, 1], [], []>} : vector<16x32xf32>, vector<32x8xf32>, vector<16x8xf32> -> vector<16x8xf32>
    %106 = vector.extract_strided_slice %44 {offsets = [3, 0, 0], sizes = [1, 1, 8], strides = [1, 1, 1]} : vector<4x1x8xf32> to vector<1x1x8xf32>
    %107 = vector.shape_cast %106 : vector<1x1x8xf32> to vector<1x8xf32>
    %108 = vector.broadcast %107 : vector<1x8xf32> to vector<16x8xf32>
    %109 = arith.addf %105, %108 : vector<16x8xf32>
    %110 = vector.shape_cast %88 : vector<16x8xf32> to vector<1x16x8xf32>
    %111 = vector.shape_cast %95 : vector<16x8xf32> to vector<1x16x8xf32>
    %112 = vector.shape_cast %102 : vector<16x8xf32> to vector<1x16x8xf32>
    %113 = vector.shape_cast %109 : vector<16x8xf32> to vector<1x16x8xf32>
    %114 = tpu.concatenate %110, %111, %112, %113 in 0 : vector<1x16x8xf32>, vector<1x16x8xf32>, vector<1x16x8xf32>, vector<1x16x8xf32> -> vector<4x16x8xf32>
    %115 = vector.extract_strided_slice %46 {offsets = [0, 0, 0], sizes = [1, 32, 8], strides = [1, 1, 1]} : vector<4x32x8xf32> to vector<1x32x8xf32>
    %116 = vector.shape_cast %115 : vector<1x32x8xf32> to vector<32x8xf32>
    %cst_59 = arith.constant dense<0.000000e+00> : vector<16x8xf32>
    %117 = tpu.matmul %36, %116, %cst_59 {dimension_numbers = #tpu.dot_dimension_numbers<[1], [0], [0], [1], [0, 0, 1, 1], [], []>} : vector<16x32xf32>, vector<32x8xf32>, vector<16x8xf32> -> vector<16x8xf32>
    %118 = vector.extract_strided_slice %48 {offsets = [0, 0, 0], sizes = [1, 1, 8], strides = [1, 1, 1]} : vector<4x1x8xf32> to vector<1x1x8xf32>
    %119 = vector.shape_cast %118 : vector<1x1x8xf32> to vector<1x8xf32>
    %120 = vector.broadcast %119 : vector<1x8xf32> to vector<16x8xf32>
    %121 = arith.addf %117, %120 : vector<16x8xf32>
    %122 = vector.extract_strided_slice %46 {offsets = [1, 0, 0], sizes = [1, 32, 8], strides = [1, 1, 1]} : vector<4x32x8xf32> to vector<1x32x8xf32>
    %123 = vector.shape_cast %122 : vector<1x32x8xf32> to vector<32x8xf32>
    %cst_60 = arith.constant dense<0.000000e+00> : vector<16x8xf32>
    %124 = tpu.matmul %36, %123, %cst_60 {dimension_numbers = #tpu.dot_dimension_numbers<[1], [0], [0], [1], [0, 0, 1, 1], [], []>} : vector<16x32xf32>, vector<32x8xf32>, vector<16x8xf32> -> vector<16x8xf32>
    %125 = vector.extract_strided_slice %48 {offsets = [1, 0, 0], sizes = [1, 1, 8], strides = [1, 1, 1]} : vector<4x1x8xf32> to vector<1x1x8xf32>
    %126 = vector.shape_cast %125 : vector<1x1x8xf32> to vector<1x8xf32>
    %127 = vector.broadcast %126 : vector<1x8xf32> to vector<16x8xf32>
    %128 = arith.addf %124, %127 : vector<16x8xf32>
    %129 = vector.extract_strided_slice %46 {offsets = [2, 0, 0], sizes = [1, 32, 8], strides = [1, 1, 1]} : vector<4x32x8xf32> to vector<1x32x8xf32>
    %130 = vector.shape_cast %129 : vector<1x32x8xf32> to vector<32x8xf32>
    %cst_61 = arith.constant dense<0.000000e+00> : vector<16x8xf32>
    %131 = tpu.matmul %36, %130, %cst_61 {dimension_numbers = #tpu.dot_dimension_numbers<[1], [0], [0], [1], [0, 0, 1, 1], [], []>} : vector<16x32xf32>, vector<32x8xf32>, vector<16x8xf32> -> vector<16x8xf32>
    %132 = vector.extract_strided_slice %48 {offsets = [2, 0, 0], sizes = [1, 1, 8], strides = [1, 1, 1]} : vector<4x1x8xf32> to vector<1x1x8xf32>
    %133 = vector.shape_cast %132 : vector<1x1x8xf32> to vector<1x8xf32>
    %134 = vector.broadcast %133 : vector<1x8xf32> to vector<16x8xf32>
    %135 = arith.addf %131, %134 : vector<16x8xf32>
    %136 = vector.extract_strided_slice %46 {offsets = [3, 0, 0], sizes = [1, 32, 8], strides = [1, 1, 1]} : vector<4x32x8xf32> to vector<1x32x8xf32>
    %137 = vector.shape_cast %136 : vector<1x32x8xf32> to vector<32x8xf32>
    %cst_62 = arith.constant dense<0.000000e+00> : vector<16x8xf32>
    %138 = tpu.matmul %36, %137, %cst_62 {dimension_numbers = #tpu.dot_dimension_numbers<[1], [0], [0], [1], [0, 0, 1, 1], [], []>} : vector<16x32xf32>, vector<32x8xf32>, vector<16x8xf32> -> vector<16x8xf32>
    %139 = vector.extract_strided_slice %48 {offsets = [3, 0, 0], sizes = [1, 1, 8], strides = [1, 1, 1]} : vector<4x1x8xf32> to vector<1x1x8xf32>
    %140 = vector.shape_cast %139 : vector<1x1x8xf32> to vector<1x8xf32>
    %141 = vector.broadcast %140 : vector<1x8xf32> to vector<16x8xf32>
    %142 = arith.addf %138, %141 : vector<16x8xf32>
    %143 = vector.shape_cast %121 : vector<16x8xf32> to vector<1x16x8xf32>
    %144 = vector.shape_cast %128 : vector<16x8xf32> to vector<1x16x8xf32>
    %145 = vector.shape_cast %135 : vector<16x8xf32> to vector<1x16x8xf32>
    %146 = vector.shape_cast %142 : vector<16x8xf32> to vector<1x16x8xf32>
    %147 = tpu.concatenate %143, %144, %145, %146 in 0 : vector<1x16x8xf32>, vector<1x16x8xf32>, vector<1x16x8xf32>, vector<1x16x8xf32> -> vector<4x16x8xf32>
    "tpu.trace_start"() <{level = 10 : i32, message = "hqd,hkd->hqk"}> : () -> ()
    %cst_63 = arith.constant dense<0.000000e+00> : vector<4x16x16xf32>
    %148 = tpu.matmul %81, %114, %cst_63 {dimension_numbers = #tpu.dot_dimension_numbers<[2], [2], [1], [1], [0, 0, 0, 1, 1, 1], [0], [0]>} : vector<4x16x8xf32>, vector<4x16x8xf32>, vector<4x16x16xf32> -> vector<4x16x16xf32>
    "tpu.trace_stop"() : () -> ()
    %cst_64 = arith.constant 0.353553385 : f32
    %149 = vector.broadcast %cst_64 : f32 to vector<4x16x16xf32>
    %150 = arith.mulf %148, %149 : vector<4x16x16xf32>
    %151 = vector.shape_cast %10 : vector<16x16xf32> to vector<1x16x16xf32>
    %cst_65 = arith.constant 0.000000e+00 : f32
    %152 = vector.broadcast %cst_65 : f32 to vector<1x16x16xf32>
    %153 = arith.cmpf oeq, %151, %152 : vector<1x16x16xf32>
    %cst_66 = arith.constant -1.000000e+09 : f32
    %154 = vector.shape_cast %153 : vector<1x16x16xi1> to vector<1x16x16xi1>
    %155 = vector.broadcast %154 : vector<1x16x16xi1> to vector<4x16x16xi1>
    %156 = vector.broadcast %cst_66 : f32 to vector<4x16x16xf32>
    %157 = arith.select %155, %156, %150 : vector<4x16x16xi1>, vector<4x16x16xf32>
    %cst_67 = arith.constant dense<0xFF800000> : vector<4x16xf32>
    %158 = vector.multi_reduction <maximumf>, %157, %cst_67 [2] : vector<4x16x16xf32> to vector<4x16xf32>
    %159 = vector.shape_cast %158 : vector<4x16xf32> to vector<4x16x1xf32>
    %160 = vector.broadcast %159 : vector<4x16x1xf32> to vector<4x16x16xf32>
    %161 = arith.subf %157, %160 : vector<4x16x16xf32>
    %162 = math.exp %161 : vector<4x16x16xf32>
    %cst_68 = arith.constant dense<0.000000e+00> : vector<4x16xf32>
    %163 = vector.multi_reduction <add>, %162, %cst_68 [2] : vector<4x16x16xf32> to vector<4x16xf32>
    %164 = vector.shape_cast %163 : vector<4x16xf32> to vector<4x16x1xf32>
    %165 = tpu.reciprocal %164 {approx = true} : vector<4x16x1xf32> -> vector<4x16x1xf32>
    %166 = vector.broadcast %165 : vector<4x16x1xf32> to vector<4x16x16xf32>
    %167 = arith.mulf %162, %166 : vector<4x16x16xf32>
    "tpu.trace_start"() <{level = 10 : i32, message = "hqk,hkd->hqd"}> : () -> ()
    %cst_69 = arith.constant dense<0.000000e+00> : vector<4x16x8xf32>
    %168 = tpu.matmul %167, %147, %cst_69 {dimension_numbers = #tpu.dot_dimension_numbers<[2], [1], [1], [2], [0, 0, 0, 1, 1, 2], [0], [0]>} : vector<4x16x16xf32>, vector<4x16x8xf32>, vector<4x16x8xf32> -> vector<4x16x8xf32>
    "tpu.trace_stop"() : () -> ()
    %169 = vector.extract_strided_slice %168 {offsets = [0, 0, 0], sizes = [1, 16, 8], strides = [1, 1, 1]} : vector<4x16x8xf32> to vector<1x16x8xf32>
    %170 = vector.shape_cast %169 : vector<1x16x8xf32> to vector<16x8xf32>
    %171 = vector.extract_strided_slice %168 {offsets = [1, 0, 0], sizes = [1, 16, 8], strides = [1, 1, 1]} : vector<4x16x8xf32> to vector<1x16x8xf32>
    %172 = vector.shape_cast %171 : vector<1x16x8xf32> to vector<16x8xf32>
    %173 = vector.extract_strided_slice %168 {offsets = [2, 0, 0], sizes = [1, 16, 8], strides = [1, 1, 1]} : vector<4x16x8xf32> to vector<1x16x8xf32>
    %174 = vector.shape_cast %173 : vector<1x16x8xf32> to vector<16x8xf32>
    %175 = vector.extract_strided_slice %168 {offsets = [3, 0, 0], sizes = [1, 16, 8], strides = [1, 1, 1]} : vector<4x16x8xf32> to vector<1x16x8xf32>
    %176 = vector.shape_cast %175 : vector<1x16x8xf32> to vector<16x8xf32>
    %177 = tpu.concatenate %170, %172, %174, %176 in 1 : vector<16x8xf32>, vector<16x8xf32>, vector<16x8xf32>, vector<16x8xf32> -> vector<16x32xf32>
    %178 = arith.addf %177, %36 : vector<16x32xf32>
    %179 = vector.extract_strided_slice %2 {offsets = [0, 0, 0], sizes = [1, 1, 32], strides = [1, 1, 1]} : vector<2x1x32xf32> to vector<1x1x32xf32>
    %180 = vector.shape_cast %179 : vector<1x1x32xf32> to vector<1x32xf32>
    %181 = vector.extract_strided_slice %3 {offsets = [0, 0, 0], sizes = [1, 1, 32], strides = [1, 1, 1]} : vector<2x1x32xf32> to vector<1x1x32xf32>
    %182 = vector.shape_cast %181 : vector<1x1x32xf32> to vector<1x32xf32>
    %cst_70 = arith.constant dense<0.000000e+00> : vector<16xf32>
    %183 = vector.multi_reduction <add>, %178, %cst_70 [1] : vector<16x32xf32> to vector<16xf32>
    %184 = vector.shape_cast %183 : vector<16xf32> to vector<16x1xf32>
    %cst_71 = arith.constant 3.200000e+01 : f32
    %185 = vector.broadcast %cst_71 : f32 to vector<16x1xf32>
    %186 = arith.divf %184, %185 : vector<16x1xf32>
    %187 = vector.broadcast %186 : vector<16x1xf32> to vector<16x32xf32>
    %188 = arith.subf %178, %187 : vector<16x32xf32>
    %189 = arith.mulf %188, %188 : vector<16x32xf32>
    %cst_72 = arith.constant dense<0.000000e+00> : vector<16xf32>
    %190 = vector.multi_reduction <add>, %189, %cst_72 [1] : vector<16x32xf32> to vector<16xf32>
    %191 = vector.shape_cast %190 : vector<16xf32> to vector<16x1xf32>
    %cst_73 = arith.constant 3.200000e+01 : f32
    %192 = vector.broadcast %cst_73 : f32 to vector<16x1xf32>
    %193 = arith.divf %191, %192 : vector<16x1xf32>
    %194 = vector.broadcast %186 : vector<16x1xf32> to vector<16x32xf32>
    %195 = arith.subf %178, %194 : vector<16x32xf32>
    %cst_74 = arith.constant 9.99999974E-6 : f32
    %196 = vector.broadcast %cst_74 : f32 to vector<16x1xf32>
    %197 = arith.addf %193, %196 : vector<16x1xf32>
    %198 = math.rsqrt %197 : vector<16x1xf32>
    %199 = vector.broadcast %198 : vector<16x1xf32> to vector<16x32xf32>
    %200 = arith.mulf %195, %199 : vector<16x32xf32>
    %201 = vector.broadcast %180 : vector<1x32xf32> to vector<16x32xf32>
    %202 = arith.mulf %200, %201 : vector<16x32xf32>
    %203 = vector.broadcast %182 : vector<1x32xf32> to vector<16x32xf32>
    %204 = arith.addf %202, %203 : vector<16x32xf32>
    %205 = arith.addf %8, %204 : vector<16x32xf32>
    %c0_75 = arith.constant 0 : index
    %c0_76 = arith.constant 0 : index
    %c0_77 = arith.constant 0 : index
    %206 = vector.load %arg13[%c0_75, %c0_76, %c0_77] : memref<2x32x64xf32, #tpu.memory_space<vmem>>, vector<1x32x64xf32>
    %207 = vector.shape_cast %206 : vector<1x32x64xf32> to vector<32x64xf32>
    %cst_78 = arith.constant dense<0.000000e+00> : vector<16x64xf32>
    %208 = tpu.matmul %205, %207, %cst_78 {dimension_numbers = #tpu.dot_dimension_numbers<[1], [0], [0], [1], [0, 0, 1, 1], [], []>} : vector<16x32xf32>, vector<32x64xf32>, vector<16x64xf32> -> vector<16x64xf32>
    %c1 = arith.constant 1 : index
    %c0_79 = arith.constant 0 : index
    %c0_80 = arith.constant 0 : index
    %209 = vector.load %arg1[%c1, %c0_79, %c0_80] : memref<2x16x32xf32, #tpu.memory_space<vmem>>, vector<1x16x32xf32>
    %210 = vector.shape_cast %209 : vector<1x16x32xf32> to vector<16x32xf32>
    %c1_81 = arith.constant 1 : index
    %c0_82 = arith.constant 0 : index
    %c0_83 = arith.constant 0 : index
    %211 = vector.load %arg2[%c1_81, %c0_82, %c0_83] : memref<2x16x16xf32, #tpu.memory_space<vmem>>, vector<1x16x16xf32>
    %212 = vector.shape_cast %211 : vector<1x16x16xf32> to vector<16x16xf32>
    %213 = vector.extract_strided_slice %0 {offsets = [1, 0, 0], sizes = [1, 1, 32], strides = [1, 1, 1]} : vector<2x1x32xf32> to vector<1x1x32xf32>
    %214 = vector.shape_cast %213 : vector<1x1x32xf32> to vector<1x32xf32>
    %215 = vector.extract_strided_slice %1 {offsets = [1, 0, 0], sizes = [1, 1, 32], strides = [1, 1, 1]} : vector<2x1x32xf32> to vector<1x1x32xf32>
    %216 = vector.shape_cast %215 : vector<1x1x32xf32> to vector<1x32xf32>
    %cst_84 = arith.constant dense<0.000000e+00> : vector<16xf32>
    %217 = vector.multi_reduction <add>, %210, %cst_84 [1] : vector<16x32xf32> to vector<16xf32>
    %218 = vector.shape_cast %217 : vector<16xf32> to vector<16x1xf32>
    %cst_85 = arith.constant 3.200000e+01 : f32
    %219 = vector.broadcast %cst_85 : f32 to vector<16x1xf32>
    %220 = arith.divf %218, %219 : vector<16x1xf32>
    %221 = vector.broadcast %220 : vector<16x1xf32> to vector<16x32xf32>
    %222 = arith.subf %210, %221 : vector<16x32xf32>
    %223 = arith.mulf %222, %222 : vector<16x32xf32>
    %cst_86 = arith.constant dense<0.000000e+00> : vector<16xf32>
    %224 = vector.multi_reduction <add>, %223, %cst_86 [1] : vector<16x32xf32> to vector<16xf32>
    %225 = vector.shape_cast %224 : vector<16xf32> to vector<16x1xf32>
    %cst_87 = arith.constant 3.200000e+01 : f32
    %226 = vector.broadcast %cst_87 : f32 to vector<16x1xf32>
    %227 = arith.divf %225, %226 : vector<16x1xf32>
    %228 = vector.broadcast %220 : vector<16x1xf32> to vector<16x32xf32>
    %229 = arith.subf %210, %228 : vector<16x32xf32>
    %cst_88 = arith.constant 9.99999974E-6 : f32
    %230 = vector.broadcast %cst_88 : f32 to vector<16x1xf32>
    %231 = arith.addf %227, %230 : vector<16x1xf32>
    %232 = math.rsqrt %231 : vector<16x1xf32>
    %233 = vector.broadcast %232 : vector<16x1xf32> to vector<16x32xf32>
    %234 = arith.mulf %229, %233 : vector<16x32xf32>
    %235 = vector.broadcast %214 : vector<1x32xf32> to vector<16x32xf32>
    %236 = arith.mulf %234, %235 : vector<16x32xf32>
    %237 = vector.broadcast %216 : vector<1x32xf32> to vector<16x32xf32>
    %238 = arith.addf %236, %237 : vector<16x32xf32>
    %c1_89 = arith.constant 1 : index
    %c0_90 = arith.constant 0 : index
    %c0_91 = arith.constant 0 : index
    %c0_92 = arith.constant 0 : index
    %239 = vector.load %arg5[%c1_89, %c0_90, %c0_91, %c0_92] : memref<2x4x32x8xf32, #tpu.memory_space<vmem>>, vector<1x4x32x8xf32>
    %240 = vector.shape_cast %239 : vector<1x4x32x8xf32> to vector<4x32x8xf32>
    %c1_93 = arith.constant 1 : index
    %c0_94 = arith.constant 0 : index
    %c0_95 = arith.constant 0 : index
    %c0_96 = arith.constant 0 : index
    %241 = vector.load %arg6[%c1_93, %c0_94, %c0_95, %c0_96] : memref<2x4x1x8xf32, #tpu.memory_space<vmem>>, vector<1x4x1x8xf32>
    %242 = vector.shape_cast %241 : vector<1x4x1x8xf32> to vector<4x1x8xf32>
    %c1_97 = arith.constant 1 : index
    %c0_98 = arith.constant 0 : index
    %c0_99 = arith.constant 0 : index
    %c0_100 = arith.constant 0 : index
    %243 = vector.load %arg7[%c1_97, %c0_98, %c0_99, %c0_100] : memref<2x4x32x8xf32, #tpu.memory_space<vmem>>, vector<1x4x32x8xf32>
    %244 = vector.shape_cast %243 : vector<1x4x32x8xf32> to vector<4x32x8xf32>
    %c1_101 = arith.constant 1 : index
    %c0_102 = arith.constant 0 : index
    %c0_103 = arith.constant 0 : index
    %c0_104 = arith.constant 0 : index
    %245 = vector.load %arg8[%c1_101, %c0_102, %c0_103, %c0_104] : memref<2x4x1x8xf32, #tpu.memory_space<vmem>>, vector<1x4x1x8xf32>
    %246 = vector.shape_cast %245 : vector<1x4x1x8xf32> to vector<4x1x8xf32>
    %c1_105 = arith.constant 1 : index
    %c0_106 = arith.constant 0 : index
    %c0_107 = arith.constant 0 : index
    %c0_108 = arith.constant 0 : index
    %247 = vector.load %arg9[%c1_105, %c0_106, %c0_107, %c0_108] : memref<2x4x32x8xf32, #tpu.memory_space<vmem>>, vector<1x4x32x8xf32>
    %248 = vector.shape_cast %247 : vector<1x4x32x8xf32> to vector<4x32x8xf32>
    %c1_109 = arith.constant 1 : index
    %c0_110 = arith.constant 0 : index
    %c0_111 = arith.constant 0 : index
    %c0_112 = arith.constant 0 : index
    %249 = vector.load %arg10[%c1_109, %c0_110, %c0_111, %c0_112] : memref<2x4x1x8xf32, #tpu.memory_space<vmem>>, vector<1x4x1x8xf32>
    %250 = vector.shape_cast %249 : vector<1x4x1x8xf32> to vector<4x1x8xf32>
    %251 = vector.extract_strided_slice %240 {offsets = [0, 0, 0], sizes = [1, 32, 8], strides = [1, 1, 1]} : vector<4x32x8xf32> to vector<1x32x8xf32>
    %252 = vector.shape_cast %251 : vector<1x32x8xf32> to vector<32x8xf32>
    %cst_113 = arith.constant dense<0.000000e+00> : vector<16x8xf32>
    %253 = tpu.matmul %238, %252, %cst_113 {dimension_numbers = #tpu.dot_dimension_numbers<[1], [0], [0], [1], [0, 0, 1, 1], [], []>} : vector<16x32xf32>, vector<32x8xf32>, vector<16x8xf32> -> vector<16x8xf32>
    %254 = vector.extract_strided_slice %242 {offsets = [0, 0, 0], sizes = [1, 1, 8], strides = [1, 1, 1]} : vector<4x1x8xf32> to vector<1x1x8xf32>
    %255 = vector.shape_cast %254 : vector<1x1x8xf32> to vector<1x8xf32>
    %256 = vector.broadcast %255 : vector<1x8xf32> to vector<16x8xf32>
    %257 = arith.addf %253, %256 : vector<16x8xf32>
    %258 = vector.extract_strided_slice %240 {offsets = [1, 0, 0], sizes = [1, 32, 8], strides = [1, 1, 1]} : vector<4x32x8xf32> to vector<1x32x8xf32>
    %259 = vector.shape_cast %258 : vector<1x32x8xf32> to vector<32x8xf32>
    %cst_114 = arith.constant dense<0.000000e+00> : vector<16x8xf32>
    %260 = tpu.matmul %238, %259, %cst_114 {dimension_numbers = #tpu.dot_dimension_numbers<[1], [0], [0], [1], [0, 0, 1, 1], [], []>} : vector<16x32xf32>, vector<32x8xf32>, vector<16x8xf32> -> vector<16x8xf32>
    %261 = vector.extract_strided_slice %242 {offsets = [1, 0, 0], sizes = [1, 1, 8], strides = [1, 1, 1]} : vector<4x1x8xf32> to vector<1x1x8xf32>
    %262 = vector.shape_cast %261 : vector<1x1x8xf32> to vector<1x8xf32>
    %263 = vector.broadcast %262 : vector<1x8xf32> to vector<16x8xf32>
    %264 = arith.addf %260, %263 : vector<16x8xf32>
    %265 = vector.extract_strided_slice %240 {offsets = [2, 0, 0], sizes = [1, 32, 8], strides = [1, 1, 1]} : vector<4x32x8xf32> to vector<1x32x8xf32>
    %266 = vector.shape_cast %265 : vector<1x32x8xf32> to vector<32x8xf32>
    %cst_115 = arith.constant dense<0.000000e+00> : vector<16x8xf32>
    %267 = tpu.matmul %238, %266, %cst_115 {dimension_numbers = #tpu.dot_dimension_numbers<[1], [0], [0], [1], [0, 0, 1, 1], [], []>} : vector<16x32xf32>, vector<32x8xf32>, vector<16x8xf32> -> vector<16x8xf32>
    %268 = vector.extract_strided_slice %242 {offsets = [2, 0, 0], sizes = [1, 1, 8], strides = [1, 1, 1]} : vector<4x1x8xf32> to vector<1x1x8xf32>
    %269 = vector.shape_cast %268 : vector<1x1x8xf32> to vector<1x8xf32>
    %270 = vector.broadcast %269 : vector<1x8xf32> to vector<16x8xf32>
    %271 = arith.addf %267, %270 : vector<16x8xf32>
    %272 = vector.extract_strided_slice %240 {offsets = [3, 0, 0], sizes = [1, 32, 8], strides = [1, 1, 1]} : vector<4x32x8xf32> to vector<1x32x8xf32>
    %273 = vector.shape_cast %272 : vector<1x32x8xf32> to vector<32x8xf32>
    %cst_116 = arith.constant dense<0.000000e+00> : vector<16x8xf32>
    %274 = tpu.matmul %238, %273, %cst_116 {dimension_numbers = #tpu.dot_dimension_numbers<[1], [0], [0], [1], [0, 0, 1, 1], [], []>} : vector<16x32xf32>, vector<32x8xf32>, vector<16x8xf32> -> vector<16x8xf32>
    %275 = vector.extract_strided_slice %242 {offsets = [3, 0, 0], sizes = [1, 1, 8], strides = [1, 1, 1]} : vector<4x1x8xf32> to vector<1x1x8xf32>
    %276 = vector.shape_cast %275 : vector<1x1x8xf32> to vector<1x8xf32>
    %277 = vector.broadcast %276 : vector<1x8xf32> to vector<16x8xf32>
    %278 = arith.addf %274, %277 : vector<16x8xf32>
    %279 = vector.shape_cast %257 : vector<16x8xf32> to vector<1x16x8xf32>
    %280 = vector.shape_cast %264 : vector<16x8xf32> to vector<1x16x8xf32>
    %281 = vector.shape_cast %271 : vector<16x8xf32> to vector<1x16x8xf32>
    %282 = vector.shape_cast %278 : vector<16x8xf32> to vector<1x16x8xf32>
    %283 = tpu.concatenate %279, %280, %281, %282 in 0 : vector<1x16x8xf32>, vector<1x16x8xf32>, vector<1x16x8xf32>, vector<1x16x8xf32> -> vector<4x16x8xf32>
    %284 = vector.extract_strided_slice %244 {offsets = [0, 0, 0], sizes = [1, 32, 8], strides = [1, 1, 1]} : vector<4x32x8xf32> to vector<1x32x8xf32>
    %285 = vector.shape_cast %284 : vector<1x32x8xf32> to vector<32x8xf32>
    %cst_117 = arith.constant dense<0.000000e+00> : vector<16x8xf32>
    %286 = tpu.matmul %238, %285, %cst_117 {dimension_numbers = #tpu.dot_dimension_numbers<[1], [0], [0], [1], [0, 0, 1, 1], [], []>} : vector<16x32xf32>, vector<32x8xf32>, vector<16x8xf32> -> vector<16x8xf32>
    %287 = vector.extract_strided_slice %246 {offsets = [0, 0, 0], sizes = [1, 1, 8], strides = [1, 1, 1]} : vector<4x1x8xf32> to vector<1x1x8xf32>
    %288 = vector.shape_cast %287 : vector<1x1x8xf32> to vector<1x8xf32>
    %289 = vector.broadcast %288 : vector<1x8xf32> to vector<16x8xf32>
    %290 = arith.addf %286, %289 : vector<16x8xf32>
    %291 = vector.extract_strided_slice %244 {offsets = [1, 0, 0], sizes = [1, 32, 8], strides = [1, 1, 1]} : vector<4x32x8xf32> to vector<1x32x8xf32>
    %292 = vector.shape_cast %291 : vector<1x32x8xf32> to vector<32x8xf32>
    %cst_118 = arith.constant dense<0.000000e+00> : vector<16x8xf32>
    %293 = tpu.matmul %238, %292, %cst_118 {dimension_numbers = #tpu.dot_dimension_numbers<[1], [0], [0], [1], [0, 0, 1, 1], [], []>} : vector<16x32xf32>, vector<32x8xf32>, vector<16x8xf32> -> vector<16x8xf32>
    %294 = vector.extract_strided_slice %246 {offsets = [1, 0, 0], sizes = [1, 1, 8], strides = [1, 1, 1]} : vector<4x1x8xf32> to vector<1x1x8xf32>
    %295 = vector.shape_cast %294 : vector<1x1x8xf32> to vector<1x8xf32>
    %296 = vector.broadcast %295 : vector<1x8xf32> to vector<16x8xf32>
    %297 = arith.addf %293, %296 : vector<16x8xf32>
    %298 = vector.extract_strided_slice %244 {offsets = [2, 0, 0], sizes = [1, 32, 8], strides = [1, 1, 1]} : vector<4x32x8xf32> to vector<1x32x8xf32>
    %299 = vector.shape_cast %298 : vector<1x32x8xf32> to vector<32x8xf32>
    %cst_119 = arith.constant dense<0.000000e+00> : vector<16x8xf32>
    %300 = tpu.matmul %238, %299, %cst_119 {dimension_numbers = #tpu.dot_dimension_numbers<[1], [0], [0], [1], [0, 0, 1, 1], [], []>} : vector<16x32xf32>, vector<32x8xf32>, vector<16x8xf32> -> vector<16x8xf32>
    %301 = vector.extract_strided_slice %246 {offsets = [2, 0, 0], sizes = [1, 1, 8], strides = [1, 1, 1]} : vector<4x1x8xf32> to vector<1x1x8xf32>
    %302 = vector.shape_cast %301 : vector<1x1x8xf32> to vector<1x8xf32>
    %303 = vector.broadcast %302 : vector<1x8xf32> to vector<16x8xf32>
    %304 = arith.addf %300, %303 : vector<16x8xf32>
    %305 = vector.extract_strided_slice %244 {offsets = [3, 0, 0], sizes = [1, 32, 8], strides = [1, 1, 1]} : vector<4x32x8xf32> to vector<1x32x8xf32>
    %306 = vector.shape_cast %305 : vector<1x32x8xf32> to vector<32x8xf32>
    %cst_120 = arith.constant dense<0.000000e+00> : vector<16x8xf32>
    %307 = tpu.matmul %238, %306, %cst_120 {dimension_numbers = #tpu.dot_dimension_numbers<[1], [0], [0], [1], [0, 0, 1, 1], [], []>} : vector<16x32xf32>, vector<32x8xf32>, vector<16x8xf32> -> vector<16x8xf32>
    %308 = vector.extract_strided_slice %246 {offsets = [3, 0, 0], sizes = [1, 1, 8], strides = [1, 1, 1]} : vector<4x1x8xf32> to vector<1x1x8xf32>
    %309 = vector.shape_cast %308 : vector<1x1x8xf32> to vector<1x8xf32>
    %310 = vector.broadcast %309 : vector<1x8xf32> to vector<16x8xf32>
    %311 = arith.addf %307, %310 : vector<16x8xf32>
    %312 = vector.shape_cast %290 : vector<16x8xf32> to vector<1x16x8xf32>
    %313 = vector.shape_cast %297 : vector<16x8xf32> to vector<1x16x8xf32>
    %314 = vector.shape_cast %304 : vector<16x8xf32> to vector<1x16x8xf32>
    %315 = vector.shape_cast %311 : vector<16x8xf32> to vector<1x16x8xf32>
    %316 = tpu.concatenate %312, %313, %314, %315 in 0 : vector<1x16x8xf32>, vector<1x16x8xf32>, vector<1x16x8xf32>, vector<1x16x8xf32> -> vector<4x16x8xf32>
    %317 = vector.extract_strided_slice %248 {offsets = [0, 0, 0], sizes = [1, 32, 8], strides = [1, 1, 1]} : vector<4x32x8xf32> to vector<1x32x8xf32>
    %318 = vector.shape_cast %317 : vector<1x32x8xf32> to vector<32x8xf32>
    %cst_121 = arith.constant dense<0.000000e+00> : vector<16x8xf32>
    %319 = tpu.matmul %238, %318, %cst_121 {dimension_numbers = #tpu.dot_dimension_numbers<[1], [0], [0], [1], [0, 0, 1, 1], [], []>} : vector<16x32xf32>, vector<32x8xf32>, vector<16x8xf32> -> vector<16x8xf32>
    %320 = vector.extract_strided_slice %250 {offsets = [0, 0, 0], sizes = [1, 1, 8], strides = [1, 1, 1]} : vector<4x1x8xf32> to vector<1x1x8xf32>
    %321 = vector.shape_cast %320 : vector<1x1x8xf32> to vector<1x8xf32>
    %322 = vector.broadcast %321 : vector<1x8xf32> to vector<16x8xf32>
    %323 = arith.addf %319, %322 : vector<16x8xf32>
    %324 = vector.extract_strided_slice %248 {offsets = [1, 0, 0], sizes = [1, 32, 8], strides = [1, 1, 1]} : vector<4x32x8xf32> to vector<1x32x8xf32>
    %325 = vector.shape_cast %324 : vector<1x32x8xf32> to vector<32x8xf32>
    %cst_122 = arith.constant dense<0.000000e+00> : vector<16x8xf32>
    %326 = tpu.matmul %238, %325, %cst_122 {dimension_numbers = #tpu.dot_dimension_numbers<[1], [0], [0], [1], [0, 0, 1, 1], [], []>} : vector<16x32xf32>, vector<32x8xf32>, vector<16x8xf32> -> vector<16x8xf32>
    %327 = vector.extract_strided_slice %250 {offsets = [1, 0, 0], sizes = [1, 1, 8], strides = [1, 1, 1]} : vector<4x1x8xf32> to vector<1x1x8xf32>
    %328 = vector.shape_cast %327 : vector<1x1x8xf32> to vector<1x8xf32>
    %329 = vector.broadcast %328 : vector<1x8xf32> to vector<16x8xf32>
    %330 = arith.addf %326, %329 : vector<16x8xf32>
    %331 = vector.extract_strided_slice %248 {offsets = [2, 0, 0], sizes = [1, 32, 8], strides = [1, 1, 1]} : vector<4x32x8xf32> to vector<1x32x8xf32>
    %332 = vector.shape_cast %331 : vector<1x32x8xf32> to vector<32x8xf32>
    %cst_123 = arith.constant dense<0.000000e+00> : vector<16x8xf32>
    %333 = tpu.matmul %238, %332, %cst_123 {dimension_numbers = #tpu.dot_dimension_numbers<[1], [0], [0], [1], [0, 0, 1, 1], [], []>} : vector<16x32xf32>, vector<32x8xf32>, vector<16x8xf32> -> vector<16x8xf32>
    %334 = vector.extract_strided_slice %250 {offsets = [2, 0, 0], sizes = [1, 1, 8], strides = [1, 1, 1]} : vector<4x1x8xf32> to vector<1x1x8xf32>
    %335 = vector.shape_cast %334 : vector<1x1x8xf32> to vector<1x8xf32>
    %336 = vector.broadcast %335 : vector<1x8xf32> to vector<16x8xf32>
    %337 = arith.addf %333, %336 : vector<16x8xf32>
    %338 = vector.extract_strided_slice %248 {offsets = [3, 0, 0], sizes = [1, 32, 8], strides = [1, 1, 1]} : vector<4x32x8xf32> to vector<1x32x8xf32>
    %339 = vector.shape_cast %338 : vector<1x32x8xf32> to vector<32x8xf32>
    %cst_124 = arith.constant dense<0.000000e+00> : vector<16x8xf32>
    %340 = tpu.matmul %238, %339, %cst_124 {dimension_numbers = #tpu.dot_dimension_numbers<[1], [0], [0], [1], [0, 0, 1, 1], [], []>} : vector<16x32xf32>, vector<32x8xf32>, vector<16x8xf32> -> vector<16x8xf32>
    %341 = vector.extract_strided_slice %250 {offsets = [3, 0, 0], sizes = [1, 1, 8], strides = [1, 1, 1]} : vector<4x1x8xf32> to vector<1x1x8xf32>
    %342 = vector.shape_cast %341 : vector<1x1x8xf32> to vector<1x8xf32>
    %343 = vector.broadcast %342 : vector<1x8xf32> to vector<16x8xf32>
    %344 = arith.addf %340, %343 : vector<16x8xf32>
    %345 = vector.shape_cast %323 : vector<16x8xf32> to vector<1x16x8xf32>
    %346 = vector.shape_cast %330 : vector<16x8xf32> to vector<1x16x8xf32>
    %347 = vector.shape_cast %337 : vector<16x8xf32> to vector<1x16x8xf32>
    %348 = vector.shape_cast %344 : vector<16x8xf32> to vector<1x16x8xf32>
    %349 = tpu.concatenate %345, %346, %347, %348 in 0 : vector<1x16x8xf32>, vector<1x16x8xf32>, vector<1x16x8xf32>, vector<1x16x8xf32> -> vector<4x16x8xf32>
    "tpu.trace_start"() <{level = 10 : i32, message = "hqd,hkd->hqk"}> : () -> ()
    %cst_125 = arith.constant dense<0.000000e+00> : vector<4x16x16xf32>
    %350 = tpu.matmul %283, %316, %cst_125 {dimension_numbers = #tpu.dot_dimension_numbers<[2], [2], [1], [1], [0, 0, 0, 1, 1, 1], [0], [0]>} : vector<4x16x8xf32>, vector<4x16x8xf32>, vector<4x16x16xf32> -> vector<4x16x16xf32>
    "tpu.trace_stop"() : () -> ()
    %cst_126 = arith.constant 0.353553385 : f32
    %351 = vector.broadcast %cst_126 : f32 to vector<4x16x16xf32>
    %352 = arith.mulf %350, %351 : vector<4x16x16xf32>
    %353 = vector.shape_cast %212 : vector<16x16xf32> to vector<1x16x16xf32>
    %cst_127 = arith.constant 0.000000e+00 : f32
    %354 = vector.broadcast %cst_127 : f32 to vector<1x16x16xf32>
    %355 = arith.cmpf oeq, %353, %354 : vector<1x16x16xf32>
    %cst_128 = arith.constant -1.000000e+09 : f32
    %356 = vector.shape_cast %355 : vector<1x16x16xi1> to vector<1x16x16xi1>
    %357 = vector.broadcast %356 : vector<1x16x16xi1> to vector<4x16x16xi1>
    %358 = vector.broadcast %cst_128 : f32 to vector<4x16x16xf32>
    %359 = arith.select %357, %358, %352 : vector<4x16x16xi1>, vector<4x16x16xf32>
    %cst_129 = arith.constant dense<0xFF800000> : vector<4x16xf32>
    %360 = vector.multi_reduction <maximumf>, %359, %cst_129 [2] : vector<4x16x16xf32> to vector<4x16xf32>
    %361 = vector.shape_cast %360 : vector<4x16xf32> to vector<4x16x1xf32>
    %362 = vector.broadcast %361 : vector<4x16x1xf32> to vector<4x16x16xf32>
    %363 = arith.subf %359, %362 : vector<4x16x16xf32>
    %364 = math.exp %363 : vector<4x16x16xf32>
    %cst_130 = arith.constant dense<0.000000e+00> : vector<4x16xf32>
    %365 = vector.multi_reduction <add>, %364, %cst_130 [2] : vector<4x16x16xf32> to vector<4x16xf32>
    %366 = vector.shape_cast %365 : vector<4x16xf32> to vector<4x16x1xf32>
    %367 = tpu.reciprocal %366 {approx = true} : vector<4x16x1xf32> -> vector<4x16x1xf32>
    %368 = vector.broadcast %367 : vector<4x16x1xf32> to vector<4x16x16xf32>
    %369 = arith.mulf %364, %368 : vector<4x16x16xf32>
    "tpu.trace_start"() <{level = 10 : i32, message = "hqk,hkd->hqd"}> : () -> ()
    %cst_131 = arith.constant dense<0.000000e+00> : vector<4x16x8xf32>
    %370 = tpu.matmul %369, %349, %cst_131 {dimension_numbers = #tpu.dot_dimension_numbers<[2], [1], [1], [2], [0, 0, 0, 1, 1, 2], [0], [0]>} : vector<4x16x16xf32>, vector<4x16x8xf32>, vector<4x16x8xf32> -> vector<4x16x8xf32>
    "tpu.trace_stop"() : () -> ()
    %371 = vector.extract_strided_slice %370 {offsets = [0, 0, 0], sizes = [1, 16, 8], strides = [1, 1, 1]} : vector<4x16x8xf32> to vector<1x16x8xf32>
    %372 = vector.shape_cast %371 : vector<1x16x8xf32> to vector<16x8xf32>
    %373 = vector.extract_strided_slice %370 {offsets = [1, 0, 0], sizes = [1, 16, 8], strides = [1, 1, 1]} : vector<4x16x8xf32> to vector<1x16x8xf32>
    %374 = vector.shape_cast %373 : vector<1x16x8xf32> to vector<16x8xf32>
    %375 = vector.extract_strided_slice %370 {offsets = [2, 0, 0], sizes = [1, 16, 8], strides = [1, 1, 1]} : vector<4x16x8xf32> to vector<1x16x8xf32>
    %376 = vector.shape_cast %375 : vector<1x16x8xf32> to vector<16x8xf32>
    %377 = vector.extract_strided_slice %370 {offsets = [3, 0, 0], sizes = [1, 16, 8], strides = [1, 1, 1]} : vector<4x16x8xf32> to vector<1x16x8xf32>
    %378 = vector.shape_cast %377 : vector<1x16x8xf32> to vector<16x8xf32>
    %379 = tpu.concatenate %372, %374, %376, %378 in 1 : vector<16x8xf32>, vector<16x8xf32>, vector<16x8xf32>, vector<16x8xf32> -> vector<16x32xf32>
    %380 = arith.addf %379, %238 : vector<16x32xf32>
    %381 = vector.extract_strided_slice %2 {offsets = [1, 0, 0], sizes = [1, 1, 32], strides = [1, 1, 1]} : vector<2x1x32xf32> to vector<1x1x32xf32>
    %382 = vector.shape_cast %381 : vector<1x1x32xf32> to vector<1x32xf32>
    %383 = vector.extract_strided_slice %3 {offsets = [1, 0, 0], sizes = [1, 1, 32], strides = [1, 1, 1]} : vector<2x1x32xf32> to vector<1x1x32xf32>
    %384 = vector.shape_cast %383 : vector<1x1x32xf32> to vector<1x32xf32>
    %cst_132 = arith.constant dense<0.000000e+00> : vector<16xf32>
    %385 = vector.multi_reduction <add>, %380, %cst_132 [1] : vector<16x32xf32> to vector<16xf32>
    %386 = vector.shape_cast %385 : vector<16xf32> to vector<16x1xf32>
    %cst_133 = arith.constant 3.200000e+01 : f32
    %387 = vector.broadcast %cst_133 : f32 to vector<16x1xf32>
    %388 = arith.divf %386, %387 : vector<16x1xf32>
    %389 = vector.broadcast %388 : vector<16x1xf32> to vector<16x32xf32>
    %390 = arith.subf %380, %389 : vector<16x32xf32>
    %391 = arith.mulf %390, %390 : vector<16x32xf32>
    %cst_134 = arith.constant dense<0.000000e+00> : vector<16xf32>
    %392 = vector.multi_reduction <add>, %391, %cst_134 [1] : vector<16x32xf32> to vector<16xf32>
    %393 = vector.shape_cast %392 : vector<16xf32> to vector<16x1xf32>
    %cst_135 = arith.constant 3.200000e+01 : f32
    %394 = vector.broadcast %cst_135 : f32 to vector<16x1xf32>
    %395 = arith.divf %393, %394 : vector<16x1xf32>
    %396 = vector.broadcast %388 : vector<16x1xf32> to vector<16x32xf32>
    %397 = arith.subf %380, %396 : vector<16x32xf32>
    %cst_136 = arith.constant 9.99999974E-6 : f32
    %398 = vector.broadcast %cst_136 : f32 to vector<16x1xf32>
    %399 = arith.addf %395, %398 : vector<16x1xf32>
    %400 = math.rsqrt %399 : vector<16x1xf32>
    %401 = vector.broadcast %400 : vector<16x1xf32> to vector<16x32xf32>
    %402 = arith.mulf %397, %401 : vector<16x32xf32>
    %403 = vector.broadcast %382 : vector<1x32xf32> to vector<16x32xf32>
    %404 = arith.mulf %402, %403 : vector<16x32xf32>
    %405 = vector.broadcast %384 : vector<1x32xf32> to vector<16x32xf32>
    %406 = arith.addf %404, %405 : vector<16x32xf32>
    %407 = arith.addf %210, %406 : vector<16x32xf32>
    %c1_137 = arith.constant 1 : index
    %c0_138 = arith.constant 0 : index
    %c0_139 = arith.constant 0 : index
    %408 = vector.load %arg13[%c1_137, %c0_138, %c0_139] : memref<2x32x64xf32, #tpu.memory_space<vmem>>, vector<1x32x64xf32>
    %409 = vector.shape_cast %408 : vector<1x32x64xf32> to vector<32x64xf32>
    %cst_140 = arith.constant dense<0.000000e+00> : vector<16x64xf32>
    %410 = tpu.matmul %407, %409, %cst_140 {dimension_numbers = #tpu.dot_dimension_numbers<[1], [0], [0], [1], [0, 0, 1, 1], [], []>} : vector<16x32xf32>, vector<32x64xf32>, vector<16x64xf32> -> vector<16x64xf32>
    %411 = arith.addf %208, %410 : vector<16x64xf32>
    %412 = vector.broadcast %4 : vector<1x64xf32> to vector<16x64xf32>
    %413 = arith.addf %411, %412 : vector<16x64xf32>
    %cst_141 = arith.constant 5.000000e-01 : f32
    %414 = vector.broadcast %cst_141 : f32 to vector<16x64xf32>
    %415 = arith.mulf %414, %413 : vector<16x64xf32>
    %cst_142 = arith.constant 0.707106769 : f32
    %416 = vector.broadcast %cst_142 : f32 to vector<16x64xf32>
    %417 = arith.mulf %413, %416 : vector<16x64xf32>
    %418 = math.erf %417 : vector<16x64xf32>
    %cst_143 = arith.constant 1.000000e+00 : f32
    %419 = vector.broadcast %cst_143 : f32 to vector<16x64xf32>
    %420 = arith.addf %419, %418 : vector<16x64xf32>
    %421 = arith.mulf %415, %420 : vector<16x64xf32>
    %cst_144 = arith.constant dense<0.000000e+00> : vector<16x64xf32>
    %422 = tpu.matmul %421, %5, %cst_144 {dimension_numbers = #tpu.dot_dimension_numbers<[1], [0], [0], [1], [0, 0, 1, 1], [], []>} : vector<16x64xf32>, vector<64x64xf32>, vector<16x64xf32> -> vector<16x64xf32>
    %423 = vector.broadcast %6 : vector<1x64xf32> to vector<16x64xf32>
    %424 = arith.addf %422, %423 : vector<16x64xf32>
    %c0_145 = arith.constant 0 : index
    %c0_146 = arith.constant 0 : index
    %425 = vector.load %arg17[%c0_145, %c0_146] : memref<16x64xf32, #tpu.memory_space<vmem>>, vector<16x64xf32>
    tpu.vector_store %arg17[%c0_145, %c0_146], %424 {strides = array<i32>} : memref<16x64xf32, #tpu.memory_space<vmem>>, vector<16x64xf32>,
    return
  }
  func.func @transform_0(%arg0: i32) -> (i32, i32, i32) {
    %c0_i32 = arith.constant 0 : i32
    %c0_i32_0 = arith.constant 0 : i32
    %c0_i32_1 = arith.constant 0 : i32
    return %c0_i32, %arg0, %c0_i32_0 : i32, i32, i32
  }
  func.func @transform_1(%arg0: i32) -> (i32, i32, i32) {
    %c0_i32 = arith.constant 0 : i32
    %c0_i32_0 = arith.constant 0 : i32
    return %c0_i32, %arg0, %arg0 : i32, i32, i32
  }
  func.func @transform_2(%arg0: i32) -> (i32, i32, i32) {
    %c0_i32 = arith.constant 0 : i32
    %c0_i32_0 = arith.constant 0 : i32
    %c0_i32_1 = arith.constant 0 : i32
    %c0_i32_2 = arith.constant 0 : i32
    return %c0_i32, %c0_i32_0, %c0_i32_1 : i32, i32, i32
  }
  func.func @transform_3(%arg0: i32) -> (i32, i32, i32) {
    %c0_i32 = arith.constant 0 : i32
    %c0_i32_0 = arith.constant 0 : i32
    %c0_i32_1 = arith.constant 0 : i32
    %c0_i32_2 = arith.constant 0 : i32
    return %c0_i32, %c0_i32_0, %c0_i32_1 : i32, i32, i32
  }
  func.func @transform_4(%arg0: i32) -> (i32, i32, i32, i32) {
    %c0_i32 = arith.constant 0 : i32
    %c0_i32_0 = arith.constant 0 : i32
    %c0_i32_1 = arith.constant 0 : i32
    %c0_i32_2 = arith.constant 0 : i32
    %c0_i32_3 = arith.constant 0 : i32
    return %c0_i32, %c0_i32_0, %c0_i32_1, %c0_i32_2 : i32, i32, i32, i32
  }
  func.func @transform_5(%arg0: i32) -> (i32, i32, i32, i32) {
    %c0_i32 = arith.constant 0 : i32
    %c0_i32_0 = arith.constant 0 : i32
    %c0_i32_1 = arith.constant 0 : i32
    %c0_i32_2 = arith.constant 0 : i32
    %c0_i32_3 = arith.constant 0 : i32
    return %c0_i32, %c0_i32_0, %c0_i32_1, %c0_i32_2 : i32, i32, i32, i32
  }
  func.func @transform_6(%arg0: i32) -> (i32, i32, i32, i32) {
    %c0_i32 = arith.constant 0 : i32
    %c0_i32_0 = arith.constant 0 : i32
    %c0_i32_1 = arith.constant 0 : i32
    %c0_i32_2 = arith.constant 0 : i32
    %c0_i32_3 = arith.constant 0 : i32
    return %c0_i32, %c0_i32_0, %c0_i32_1, %c0_i32_2 : i32, i32, i32, i32
  }
  func.func @transform_7(%arg0: i32) -> (i32, i32, i32, i32) {
    %c0_i32 = arith.constant 0 : i32
    %c0_i32_0 = arith.constant 0 : i32
    %c0_i32_1 = arith.constant 0 : i32
    %c0_i32_2 = arith.constant 0 : i32
    %c0_i32_3 = arith.constant 0 : i32
    return %c0_i32, %c0_i32_0, %c0_i32_1, %c0_i32_2 : i32, i32, i32, i32
  }
  func.func @transform_8(%arg0: i32) -> (i32, i32, i32, i32) {
    %c0_i32 = arith.constant 0 : i32
    %c0_i32_0 = arith.constant 0 : i32
    %c0_i32_1 = arith.constant 0 : i32
    %c0_i32_2 = arith.constant 0 : i32
    %c0_i32_3 = arith.constant 0 : i32
    return %c0_i32, %c0_i32_0, %c0_i32_1, %c0_i32_2 : i32, i32, i32, i32
  }
  func.func @transform_9(%arg0: i32) -> (i32, i32, i32, i32) {
    %c0_i32 = arith.constant 0 : i32
    %c0_i32_0 = arith.constant 0 : i32
    %c0_i32_1 = arith.constant 0 : i32
    %c0_i32_2 = arith.constant 0 : i32
    %c0_i32_3 = arith.constant 0 : i32
    return %c0_i32, %c0_i32_0, %c0_i32_1, %c0_i32_2 : i32, i32, i32, i32
  }
  func.func @transform_10(%arg0: i32) -> (i32, i32, i32) {
    %c0_i32 = arith.constant 0 : i32
    %c0_i32_0 = arith.constant 0 : i32
    %c0_i32_1 = arith.constant 0 : i32
    %c0_i32_2 = arith.constant 0 : i32
    return %c0_i32, %c0_i32_0, %c0_i32_1 : i32, i32, i32
  }
  func.func @transform_11(%arg0: i32) -> (i32, i32, i32) {
    %c0_i32 = arith.constant 0 : i32
    %c0_i32_0 = arith.constant 0 : i32
    %c0_i32_1 = arith.constant 0 : i32
    %c0_i32_2 = arith.constant 0 : i32
    return %c0_i32, %c0_i32_0, %c0_i32_1 : i32, i32, i32
  }
  func.func @transform_12(%arg0: i32) -> (i32, i32, i32) {
    %c0_i32 = arith.constant 0 : i32
    %c0_i32_0 = arith.constant 0 : i32
    %c0_i32_1 = arith.constant 0 : i32
    %c0_i32_2 = arith.constant 0 : i32
    return %c0_i32, %c0_i32_0, %c0_i32_1 : i32, i32, i32
  }
  func.func @transform_13(%arg0: i32) -> (i32, i32) {
    %c0_i32 = arith.constant 0 : i32
    %c0_i32_0 = arith.constant 0 : i32
    %c0_i32_1 = arith.constant 0 : i32
    return %c0_i32, %c0_i32_0 : i32, i32
  }
  func.func @transform_14(%arg0: i32) -> (i32, i32) {
    %c0_i32 = arith.constant 0 : i32
    %c0_i32_0 = arith.constant 0 : i32
    %c0_i32_1 = arith.constant 0 : i32
    return %c0_i32, %c0_i32_0 : i32, i32
  }
  func.func @transform_15(%arg0: i32) -> (i32, i32) {
    %c0_i32 = arith.constant 0 : i32
    %c0_i32_0 = arith.constant 0 : i32
    %c0_i32_1 = arith.constant 0 : i32
    return %c0_i32, %c0_i32_0 : i32, i32
  }
  func.func @transform_16(%arg0: i32) -> (i32, i32) {
    %c0_i32 = arith.constant 0 : i32
    %c0_i32_0 = arith.constant 0 : i32
    return %arg0, %c0_i32 : i32, i32
  }
}

</mosaic_0001>

<bundles_post_ra>
// kernel: tpu_custom_call.1
= control target key start
LH: loop header
LB: loop body
LE: loop exit
PB: predicated region body
PF: predicated region fallthrough
CT: control target
= control target key end

     0   :  { %s6455_s0 = inlined_call_operand.vmem [shape: f32[2,16,32], index: 0, kind: input, shape index: {}]   ;;  %s6456_s1 = inlined_call_operand.vmem [shape: f32[2,16,16], index: 1, kind: input, shape index: {}]   ;;  %s6457_s2 = inlined_call_operand.vmem [shape: f32[2,1,32], index: 2, kind: input, shape index: {}]   ;;  %s6458_s3 = inlined_call_operand.vmem [shape: f32[2,1,32], index: 3, kind: input, shape index: {}]   ;;  %s6459_s4 = inlined_call_operand.vmem [shape: f32[2,4,32,8], index: 4, kind: input, shape index: {}]   ;;  %s6460_s5 = inlined_call_operand.vmem [shape: f32[2,4,1,8], index: 5, kind: input, shape index: {}]   ;;  %s6461_s6 = inlined_call_operand.vmem [shape: f32[2,4,32,8], index: 6, kind: input, shape index: {}]   ;;  %s6462_s7 = inlined_call_operand.vmem [shape: f32[2,4,1,8], index: 7, kind: input, shape index: {}]   ;;  %s6463_s8 = inlined_call_operand.vmem [shape: f32[2,4,32,8], index: 8, kind: input, shape index: {}]   ;;  %s6464_s9 = inlined_call_operand.vmem [shape: f32[2,4,1,8], index: 9, kind: input, shape index: {}]   ;;  %s6465_s10 = inlined_call_operand.vmem [shape: f32[2,1,32], index: 10, kind: input, shape index: {}]   ;;  %s6466_s11 = inlined_call_operand.vmem [shape: f32[2,1,32], index: 11, kind: input, shape index: {}]   ;;  %s6467_s12 = inlined_call_operand.vmem [shape: f32[2,32,64], index: 12, kind: input, shape index: {}]   ;;  %s6468_s13 = inlined_call_operand.vmem [shape: f32[1,64], index: 13, kind: input, shape index: {}]   ;;  %s6469_s14 = inlined_call_operand.vmem [shape: f32[64,64], index: 14, kind: input, shape index: {}]   ;;  %s6470_s15 = inlined_call_operand.vmem [shape: f32[1,64], index: 15, kind: input, shape index: {}]   ;;  %s6471_s16 = inlined_call_operand.hbm [shape: f32[16,64], index: 16, kind: output, shape index: {}]  }
   0x1   :  { %6473 = sst [smem:[#allocation5_spill]] %s6455_s0 }
   0x2   :  { %s6474_s23 = sld [smem:[#allocation5_spill]]  ;;  %vm76_vm0 = vcmask 261120  }
   0x8   :  { %v72_v0 = vld [vmem:[%s6474_s23] sm:$0xff]  ;;  %v73_v1 = vld [vmem:[%s6474_s23 + $0x8] sm:$0xff] }
   0x9   :  { %21 = vsyncpa [#allocation3], 0  ;;  %v77_v2 = vsel %vm76_vm0, %v72_v0, 0.0  ;;  %v80_v3 = vsel %vm76_vm0, %v73_v1, 0.0  ;;  %v120_v14 = vld [vmem:[%s6459_s4] sm:$0xff]  ;;  %v121_v15 = vld [vmem:[%s6459_s4 + $0x8] sm:$0xff] }
   0xa   :  { %78 = vadd.xlane.f32.xlu0 %v77_v2  ;;  %v124_v16 = vld [vmem:[%s6459_s4 + $0x20] sm:$0xff]  ;;  %v5115_v17 = vpack.c.bf16 %v121_v15, %v120_v14  ;;  %v125_v18 = vld [vmem:[%s6459_s4 + $0x28] sm:$0xff]  ;;  %v122_v20 = vld [vmem:[%s6459_s4 + $0x10] sm:$0xff]  ;;  %vm1158_vm1 = vcmask 64512   ;;  %vm1529_vm4 = vcmask 130048   ;;  %s5540_s21 = smov 24  }
   0xb   :  { %v5123_v19 = vpack.c.bf16 %v125_v18, %v124_v16  ;;  %v123_v21 = vld [vmem:[%s6459_s4 + $0x18] sm:$0xff]  ;;  %v126_v22 = vld [vmem:[%s6459_s4 + $0x30] sm:$0xff]  ;;  %v128_v26 = vld [vmem:[%s6459_s4 + $0x40] sm:$0xff]  ;;  %vm1970_vm8 = vcmask 195584   ;;  %vm4164_vm9 = vcmask 523264   ;;  %s5541_s25 = smov [#allocation2]  }
   0xc   :  { %5116 = vmatprep.subr.bf16.mxu0 %v5115_v17  ;;  %v5119_v23 = vpack.c.bf16 %v123_v21, %v122_v20  ;;  %v127_v24 = vld [vmem:[%s6459_s4 + $0x38] sm:$0xff]  ;;  %v129_v27 = vld [vmem:[%s6459_s4 + $0x48] sm:$0xff]  ;;  %v132_v28 = vld [vmem:[%s6459_s4 + $0x60] sm:$0xff]  ;;  %s4253_s26 = sshll.u32 %s5541_s25, 4  ;;  %s4254_s26 = int_to_ptr.vmem [resolvable:$true] %s4253_s26 }
   0xd   :  { %5124 = vmatprep.subr.bf16.mxu1 %v5123_v19  ;;  %5118 = vmatpush3.bf16.msra.mxu0 %v5115_v17  ;;  %v5127_v25 = vpack.c.bf16 %v127_v24, %v126_v22  ;;  %v5131_v29 = vpack.c.bf16 %v129_v27, %v128_v26  ;;  %v133_v30 = vld [vmem:[%s6459_s4 + $0x68] sm:$0xff]  ;;  %v4264_v39 = vld [vmem:[%s6457_s2] ss:$0 sm:$0xff]  ;;  %v130_v46 = vld [vmem:[%s6459_s4 + $0x50] sm:$0xff]  ;;  %p5519_p1 = scmp.lt.s32.totalorder %s4254_s26, %s4254_s26 }
   0xe   :  { %81 = vadd.xlane.f32.xlu0 %v80_v3  ;;  %5126 = vmatpush3.bf16.msra.mxu1 %v5123_v19  ;;  %v5139_v31 = vpack.c.bf16 %v133_v30, %v132_v28  ;;  %v4265_v41 = vld [vmem:[%s6458_s3] ss:$0 sm:$0xff]  ;;  %v131_v48 = vld [vmem:[%s6459_s4 + $0x58] sm:$0xff]  ;;  %v134_v49 = vld [vmem:[%s6459_s4 + $0x70] sm:$0xff] }
   0xf   :  { %5120 = vmatprep.subr.bf16.mxu0 %v5119_v23  ;;  %5128 = vmatprep.subr.bf16.mxu1 %v5127_v25  ;;  %v135_v50 = vld [vmem:[%s6459_s4 + $0x78] sm:$0xff]  ;;  %v140_v52 = vld [vmem:[%s6461_s6] sm:$0xff]  ;;  %v5135_v53 = vpack.c.bf16 %v131_v48, %v130_v46  ;;  %v141_v55 = vld [vmem:[%s6461_s6 + $0x8] sm:$0xff] }
  0x10   :  { %v5143_v54 = vpack.c.bf16 %v135_v50, %v134_v49  ;;  %v144_v56 = vld [vmem:[%s6461_s6 + $0x20] sm:$0xff]  ;;  %v145_v57 = vld [vmem:[%s6461_s6 + $0x28] sm:$0xff]  ;;  %v5147_v58 = vpack.c.bf16 %v141_v55, %v140_v52  ;;  %v142_v60 = vld [vmem:[%s6461_s6 + $0x10] sm:$0xff] }
  0x11   :  { %5122 = vmatpush3.bf16.msra.mxu0 %v5119_v23  ;;  %v5155_v59 = vpack.c.bf16 %v145_v57, %v144_v56  ;;  %v143_v61 = vld [vmem:[%s6461_s6 + $0x18] sm:$0xff]  ;;  %v146_v62 = vld [vmem:[%s6461_s6 + $0x30] sm:$0xff]  ;;  %v148_v2 = vld [vmem:[%s6461_s6 + $0x40] sm:$0xff] }
  0x12   :  { %5130 = vmatpush3.bf16.msra.mxu1 %v5127_v25  ;;  %5132 = vmatprep.subr.bf16.mxu0 %v5131_v29  ;;  %v147_v63 = vld [vmem:[%s6461_s6 + $0x38] sm:$0xff]  ;;  %v149_v3 = vld [vmem:[%s6461_s6 + $0x48] sm:$0xff]  ;;  %v164_v16 = vld [vmem:[%s6463_s8 + $0x20] sm:$0xff] }
  0x13   :  { %5140 = vmatprep.subr.bf16.mxu1 %v5139_v31  ;;  %v161_v14 = vld [vmem:[%s6463_s8 + $0x8] sm:$0xff]  ;;  %v162_v20 = vld [vmem:[%s6463_s8 + $0x10] sm:$0xff]  ;;  %v163_v21 = vld [vmem:[%s6463_s8 + $0x18] sm:$0xff] }
  0x14   :  { %v165_v17 = vld [vmem:[%s6463_s8 + $0x28] sm:$0xff]  ;;  %v166_v22 = vld [vmem:[%s6463_s8 + $0x30] sm:$0xff]  ;;  %v167_v23 = vld [vmem:[%s6463_s8 + $0x38] sm:$0xff]  ;;  %v5183_v24 = vpack.c.bf16 %v163_v21, %v162_v20 }
  0x15   :  { %v5187_v19 = vpack.c.bf16 %v165_v17, %v164_v16  ;;  %v168_v25 = vld [vmem:[%s6463_s8 + $0x40] sm:$0xff]  ;;  %v169_v26 = vld [vmem:[%s6463_s8 + $0x48] sm:$0xff]  ;;  %v5191_v27 = vpack.c.bf16 %v167_v23, %v166_v22  ;;  %vm5856_vm2 = vmpackc.low %vm1158_vm1, %vm1158_vm1 }
  0x16   :  { %v172_v28 = vld [vmem:[%s6463_s8 + $0x60] sm:$0xff]  ;;  %v5195_v30 = vpack.c.bf16 %v169_v26, %v168_v25 }
  0x17   :  { %v4278_v52 = vld [vmem:[%s6462_s7] ss:$0 sm:$0xff]  ;;  %v4293_v20 = vld [vmem:[%s6464_s9 + $0x1] ss:$0 sm:$0xff] }
  0x97   :  { %v79_v4 = vpop.xlane.xlu0 %78 }
  0x98   :  { %v84_v5 = vmul.f32 0.03125, %v79_v4  ;;  %v152_v4 = vld [vmem:[%s6461_s6 + $0x60] sm:$0xff] }
  0x9a   :  { %v86_v6 = vsub.f32 %v72_v0, %v84_v5  ;;  %v5151_v0 = vpack.c.bf16 %v143_v61, %v142_v60  ;;  %v153_v5 = vld [vmem:[%s6461_s6 + $0x68] sm:$0xff] }
  0x9b   :  { %v82_v7 = vpop.xlane.xlu0 %81 }
  0x9c   :  { %v85_v8 = vmul.f32 0.03125, %v82_v7  ;;  %v88_v9 = vmul.f32 %v86_v6, %v86_v6  ;;  %v5171_v7 = vpack.c.bf16 %v153_v5, %v152_v4 }
  0x9e   :  { %v87_v10 = vsub.f32 %v73_v1, %v85_v8  ;;  %v90_v11 = vsel %vm76_vm0, %v88_v9, 0.0  ;;  %v5159_v1 = vpack.c.bf16 %v147_v63, %v146_v62  ;;  %v150_v8 = vld [vmem:[%s6461_s6 + $0x50] sm:$0xff]  ;;  %v151_v9 = vld [vmem:[%s6461_s6 + $0x58] sm:$0xff] }
  0x9f   :  { %91 = vadd.xlane.f32.xlu1 %v90_v11  ;;  %v155_v11 = vld [vmem:[%s6461_s6 + $0x78] sm:$0xff] }
  0xa0   :  { %v89_v12 = vmul.f32 %v87_v10, %v87_v10 }
  0xa2   :  { %v93_v13 = vsel %vm76_vm0, %v89_v12, 0.0  ;;  %v5167_v12 = vpack.c.bf16 %v151_v9, %v150_v8 }
  0xa3   :  { %94 = vadd.xlane.f32.xlu1 %v93_v13  ;;  %v160_v13 = vld [vmem:[%s6463_s8] sm:$0xff] }
  0xa4   :  { %v5179_v18 = vpack.c.bf16 %v161_v14, %v160_v13  ;;  %v4275_v13 = vld [vmem:[%s6460_s5 + $0x3] ss:$0 sm:$0xff] }
 0x12c   :  { %v92_v32 = vpop.xlane.xlu1 %91 }
 0x12d   :  { %v96_v33 = vmul.f32 0.03125, %v92_v32  ;;  %v170_v32 = vld [vmem:[%s6463_s8 + $0x50] sm:$0xff] }
 0x12f   :  { %v98_v34 = vadd.f32 1e-05, %v96_v33  ;;  %v171_v33 = vld [vmem:[%s6463_s8 + $0x58] sm:$0xff] }
 0x130   :  { %v95_v35 = vpop.xlane.xlu1 %94 }
 0x131   :  { %5426 = vrsqrt.f32 %v98_v34  ;;  %v97_v36 = vmul.f32 0.03125, %v95_v35  ;;  %v174_v34 = vld [vmem:[%s6463_s8 + $0x70] sm:$0xff]  ;;  %v175_v35 = vld [vmem:[%s6463_s8 + $0x78] sm:$0xff] }
 0x133   :  { %v99_v37 = vadd.f32 1e-05, %v97_v36  ;;  %v5199_v36 = vpack.c.bf16 %v171_v33, %v170_v32  ;;  %v4296_v33 = vld [vmem:[%s6464_s9 + $0x2] ss:$0 sm:$0xff] }
 0x135   :  { %5428 = vrsqrt.f32 %v99_v37  ;;  %v5207_v37 = vpack.c.bf16 %v175_v35, %v174_v34  ;;  %v4299_v34 = vld [vmem:[%s6464_s9 + $0x3] ss:$0 sm:$0xff] }
 0x13b   :  { %v5427_v38 = vpop.eup %5426 }
 0x13c   :  { %v102_v40 = vmul.f32 %v5427_v38, %v86_v6  ;;  %v5163_v6 = vpack.c.bf16 %v149_v3, %v148_v2  ;;  %v4266_v38 = vld [vmem:[%s6460_s5] ss:$0 sm:$0xff]  ;;  %v4287_v2 = vld [vmem:[%s6462_s7 + $0x3] ss:$0 sm:$0xff] }
 0x13e   :  { %v110_v42 = vmul.f32 %v4264_v39, %v102_v40 }
 0x13f   :  { %v5429_v43 = vpop.eup %5428 }
 0x140   :  { %v5680_v44 = vadd.f32 %v4265_v41, %v110_v42  ;;  %v103_v45 = vmul.f32 %v5429_v43, %v87_v10  ;;  %v154_v10 = vld [vmem:[%s6461_s6 + $0x70] sm:$0xff] }
 0x141   :  { %v5175_v15 = vpack.c.bf16 %v155_v11, %v154_v10  ;;  %v4272_v10 = vld [vmem:[%s6460_s5 + $0x2] ss:$0 sm:$0xff] }
 0x142   :  { %v111_v47 = vmul.f32 %v4264_v39, %v103_v45  ;;  %4706 = vmatprep.mubr.msk.f32.mxu0 %vm76_vm0, %v5680_v44  ;;  %4717 = vmatprep.mubr.msk.f32.mxu1 %vm76_vm0, %v5680_v44  ;;  %v4269_v39 = vld [vmem:[%s6460_s5 + $0x1] ss:$0 sm:$0xff] }
 0x144   :  { %v5698_v51 = vadd.f32 %v4265_v41, %v111_v47 }
 0x146   :  { %4707 = vmatmul.mubr.msk.f32.vlgmr.msra.gmra.mrb[0].mxu0 %vm76_vm0, %v5698_v51  ;;  %4718 = vmatmul.mubr.msk.f32.vlgmr.msra.gmra.mrb[0].mxu1 %vm76_vm0, %v5698_v51 }
 0x147   :  { %5134 = vmatpush3.bf16.msra.mxu0 %v5131_v29  ;;  %5142 = vmatpush3.bf16.msra.mxu1 %v5139_v31  ;;  %v173_v29 = vld [vmem:[%s6463_s8 + $0x68] sm:$0xff] }
 0x148   :  { %4728 = vmatprep.mubr.msk.f32.mxu0 %vm76_vm0, %v5680_v44  ;;  %4739 = vmatprep.mubr.msk.f32.mxu1 %vm76_vm0, %v5680_v44  ;;  %v5203_v31 = vpack.c.bf16 %v173_v29, %v172_v28 }
 0x149   :  { %5136 = vmatprep.subr.bf16.mxu0 %v5135_v53  ;;  %5144 = vmatprep.subr.bf16.mxu1 %v5143_v54 }
 0x14b   :  { %5138 = vmatpush3.bf16.msra.mxu0 %v5135_v53  ;;  %5146 = vmatpush3.bf16.msra.mxu1 %v5143_v54  ;;  %v4281_v53 = vld [vmem:[%s6462_s7 + $0x1] ss:$0 sm:$0xff] }
 0x14c   :  { %5148 = vmatprep.subr.bf16.mxu0 %v5147_v58  ;;  %5156 = vmatprep.subr.bf16.mxu1 %v5155_v59 }
 0x14e   :  { %4729 = vmatmul.mubr.msk.f32.vlgmr.msra.gmra.mrb[2].mxu0 %vm76_vm0, %v5698_v51  ;;  %4740 = vmatmul.mubr.msk.f32.vlgmr.msra.gmra.mrb[2].mxu1 %vm76_vm0, %v5698_v51 }
 0x14f   :  { %5150 = vmatpush3.bf16.msra.mxu0 %v5147_v58  ;;  %4750 = vmatprep.mubr.msk.f32.mxu0 %vm76_vm0, %v5680_v44 }
 0x150   :  { %5158 = vmatpush3.bf16.msra.mxu1 %v5155_v59  ;;  %4761 = vmatprep.mubr.msk.f32.mxu1 %vm76_vm0, %v5680_v44 }
 0x151   :  { %5152 = vmatprep.subr.bf16.mxu0 %v5151_v0  ;;  %5160 = vmatprep.subr.bf16.mxu1 %v5159_v1 }
 0x153   :  { %5154 = vmatpush3.bf16.msra.mxu0 %v5151_v0 }
 0x154   :  { %5162 = vmatpush3.bf16.msra.mxu1 %v5159_v1  ;;  %5164 = vmatprep.subr.bf16.mxu0 %v5163_v6  ;;  %v4284_v1 = vld [vmem:[%s6462_s7 + $0x2] ss:$0 sm:$0xff] }
 0x155   :  { %5172 = vmatprep.subr.bf16.mxu1 %v5171_v7 }
 0x156   :  { %4751 = vmatmul.mubr.msk.f32.vlgmr.msra.gmra.mrb[4].mxu0 %vm76_vm0, %v5698_v51 }
 0x157   :  { %4762 = vmatmul.mubr.msk.f32.vlgmr.msra.gmra.mrb[4].mxu1 %vm76_vm0, %v5698_v51  ;;  %5166 = vmatpush3.bf16.msra.mxu0 %v5163_v6 }
 0x158   :  { %4772 = vmatprep.mubr.msk.f32.mxu0 %vm76_vm0, %v5680_v44  ;;  %5174 = vmatpush3.bf16.msra.mxu1 %v5171_v7 }
 0x159   :  { %4783 = vmatprep.mubr.msk.f32.mxu1 %vm76_vm0, %v5680_v44  ;;  %5168 = vmatprep.subr.bf16.mxu0 %v5167_v12 }
 0x15a   :  { %5176 = vmatprep.subr.bf16.mxu1 %v5175_v15 }
 0x15b   :  { %5170 = vmatpush3.bf16.msra.mxu0 %v5167_v12 }
 0x15c   :  { %5178 = vmatpush3.bf16.msra.mxu1 %v5175_v15  ;;  %5180 = vmatprep.subr.bf16.mxu0 %v5179_v18 }
 0x15d   :  { %5188 = vmatprep.subr.bf16.mxu1 %v5187_v19 }
 0x15e   :  { %4773 = vmatmul.mubr.msk.f32.vlgmr.msra.gmra.mrb[6].mxu0 %vm76_vm0, %v5698_v51 }
 0x15f   :  { %4784 = vmatmul.mubr.msk.f32.vlgmr.msra.gmra.mrb[6].mxu1 %vm76_vm0, %v5698_v51  ;;  %5182 = vmatpush3.bf16.msra.mxu0 %v5179_v18  ;;  %v4290_v18 = vld [vmem:[%s6464_s9] ss:$0 sm:$0xff] }
 0x160   :  { %4794 = vmatprep.mubr.msk.f32.mxu0 %vm76_vm0, %v5680_v44  ;;  %5190 = vmatpush3.bf16.msra.mxu1 %v5187_v19 }
 0x161   :  { %4805 = vmatprep.mubr.msk.f32.mxu1 %vm76_vm0, %v5680_v44  ;;  %5184 = vmatprep.subr.bf16.mxu0 %v5183_v24 }
 0x162   :  { %5192 = vmatprep.subr.bf16.mxu1 %v5191_v27 }
 0x163   :  { %5186 = vmatpush3.bf16.msra.mxu0 %v5183_v24 }
 0x164   :  { %5194 = vmatpush3.bf16.msra.mxu1 %v5191_v27  ;;  %5196 = vmatprep.subr.bf16.mxu0 %v5195_v30 }
 0x165   :  { %5204 = vmatprep.subr.bf16.mxu1 %v5203_v31 }
 0x166   :  { %4795 = vmatmul.mubr.msk.f32.vlgmr.msra.gmra.mrb[8].mxu0 %vm76_vm0, %v5698_v51 }
 0x167   :  { %4806 = vmatmul.mubr.msk.f32.vlgmr.msra.gmra.mrb[8].mxu1 %vm76_vm0, %v5698_v51  ;;  %5198 = vmatpush3.bf16.msra.mxu0 %v5195_v30 }
 0x168   :  { %4816 = vmatprep.mubr.msk.f32.mxu0 %vm76_vm0, %v5680_v44  ;;  %5206 = vmatpush3.bf16.msra.mxu1 %v5203_v31 }
 0x169   :  { %4827 = vmatprep.mubr.msk.f32.mxu1 %vm76_vm0, %v5680_v44  ;;  %5200 = vmatprep.subr.bf16.mxu0 %v5199_v36 }
 0x16a   :  { %5208 = vmatprep.subr.bf16.mxu1 %v5207_v37 }
 0x16b   :  { %5202 = vmatpush3.bf16.msra.mxu0 %v5199_v36 }
 0x16c   :  { %5210 = vmatpush3.bf16.msra.mxu1 %v5207_v37 }
 0x16e   :  { %4817 = vmatmul.mubr.msk.f32.vlgmr.msra.gmra.mrb[10].mxu0 %vm76_vm0, %v5698_v51 }
 0x16f   :  { %4828 = vmatmul.mubr.msk.f32.vlgmr.msra.gmra.mrb[10].mxu1 %vm76_vm0, %v5698_v51 }
 0x219   :  { %v4708_v40 = vpop.f32.mrb[0].mxu0  ;;  %v4719_v41 = vpop.f32.mrb[0].mxu1 }
 0x21a   :  { %v258_v42 = vpop.f32.mrb[1].mxu0  ;;  %v339_v43 = vpop.f32.mrb[1].mxu1  ;;  %v264_v12 = vadd.f32 %v4708_v40, %v4266_v38  ;;  %v345_v15 = vadd.f32 %v4719_v41, %v4269_v39 }
 0x21b   :  { %v259_v45 = vadd.f32 %v4266_v38, %v258_v42  ;;  %v340_v46 = vadd.f32 %v4269_v39, %v339_v43 }
 0x21d   :  { %4834 = vmatprep.mubr.msk.f32.mxu0 %vm1158_vm1, %v259_v45  ;;  %4841 = vmatprep.mubr.msk.f32.mxu1 %vm1158_vm1, %v340_v46  ;;  %v75_v46 = vld [vmem:[%s6456_s1 + $0x8] sm:$0xff] }
 0x21e   :  { %vm1516_vm3 = vcmp.eq.f32.partialorder %v75_v46, 0.0 }
 0x221   :  { %v4730_v47 = vpop.f32.mrb[2].mxu0  ;;  %v4741_v48 = vpop.f32.mrb[2].mxu1 }
 0x222   :  { %v420_v49 = vpop.f32.mrb[3].mxu0  ;;  %v501_v50 = vpop.f32.mrb[3].mxu1  ;;  %v426_v30 = vadd.f32 %v4730_v47, %v4272_v10  ;;  %v507_v32 = vadd.f32 %v4741_v48, %v4275_v13  ;;  %v74_v47 = vld [vmem:[%s6456_s1] sm:$0xff] }
 0x223   :  { %v421_v17 = vadd.f32 %v4272_v10, %v420_v49  ;;  %v502_v19 = vadd.f32 %v4275_v13, %v501_v50  ;;  %vm1515_vm5 = vcmp.eq.f32.partialorder %v74_v47, 0.0 }
 0x229   :  { %v4752_v54 = vpop.f32.mrb[4].mxu0 }
 0x22a   :  { %v588_v55 = vadd.f32 %v4752_v54, %v4278_v52  ;;  %v4763_v56 = vpop.f32.mrb[4].mxu1  ;;  %v582_v57 = vpop.f32.mrb[5].mxu0 }
 0x22b   :  { %v669_v58 = vadd.f32 %v4763_v56, %v4281_v53  ;;  %v583_v59 = vadd.f32 %v4278_v52, %v582_v57  ;;  %v663_v60 = vpop.f32.mrb[5].mxu1 }
 0x22c   :  { %v664_v61 = vadd.f32 %v4281_v53, %v663_v60 }
 0x22d   :  { %v5211_v63 = vpack.c.bf16 %v588_v55, %v583_v59 }
 0x22e   :  { %v5217_v0 = vpack.c.bf16 %v669_v58, %v664_v61 }
 0x22f   :  { %5213 = vmatprep.subr.msk.bf16.mxu0 %vm5856_vm2, %v5211_v63 }
 0x230   :  { %5219 = vmatprep.subr.msk.bf16.mxu1 %vm5856_vm2, %v5217_v0  ;;  %5216 = vmatpush3.bf16.xpose.msk.msra.mxu0 %vm5856_vm2, %v5211_v63 }
 0x231   :  { %5222 = vmatpush3.bf16.xpose.msk.msra.mxu1 %vm5856_vm2, %v5217_v0  ;;  %v4774_v3 = vpop.f32.mrb[6].mxu0 }
 0x232   :  { %v750_v4 = vadd.f32 %v4774_v3, %v4284_v1  ;;  %v4785_v5 = vpop.f32.mrb[6].mxu1  ;;  %v744_v6 = vpop.f32.mrb[7].mxu0 }
 0x233   :  { %v831_v7 = vadd.f32 %v4785_v5, %v4287_v2  ;;  %v745_v8 = vadd.f32 %v4284_v1, %v744_v6  ;;  %v825_v9 = vpop.f32.mrb[7].mxu1 }
 0x234   :  { %v826_v11 = vadd.f32 %v4287_v2, %v825_v9 }
 0x235   :  { %v5223_v14 = vpack.c.bf16 %v750_v4, %v745_v8 }
 0x236   :  { %v5229_v16 = vpack.c.bf16 %v831_v7, %v826_v11 }
 0x237   :  { %4835 = vmatmul.mubr.msk.f32.vlgmr.msra.gmra.mrb[12].mxu0 %vm1158_vm1, %v264_v12  ;;  %5225 = vmatprep.subr.msk.bf16.mxu0 %vm5856_vm2, %v5223_v14 }
 0x238   :  { %4842 = vmatmul.mubr.msk.f32.vlgmr.msra.gmra.mrb[12].mxu1 %vm1158_vm1, %v345_v15  ;;  %5231 = vmatprep.subr.msk.bf16.mxu1 %vm5856_vm2, %v5229_v16 }
 0x239   :  { %5228 = vmatpush3.bf16.xpose.msk.msra.mxu0 %vm5856_vm2, %v5223_v14  ;;  %4848 = vmatprep.mubr.msk.f32.mxu0 %vm1158_vm1, %v421_v17  ;;  %v4796_v21 = vpop.f32.mrb[8].mxu0 }
 0x23a   :  { %5234 = vmatpush3.bf16.xpose.msk.msra.mxu1 %vm5856_vm2, %v5229_v16  ;;  %4855 = vmatprep.mubr.msk.f32.mxu1 %vm1158_vm1, %v502_v19  ;;  %v912_v22 = vadd.f32 %v4796_v21, %v4290_v18  ;;  %v4807_v23 = vpop.f32.mrb[8].mxu1  ;;  %v906_v24 = vpop.f32.mrb[9].mxu0  ;;  %v4329_v16 = vld [vmem:[%s6474_s23 + $0x18] sm:$0xff] }
 0x23b   :  { %v993_v25 = vadd.f32 %v4807_v23, %v4293_v20  ;;  %v907_v26 = vadd.f32 %v4290_v18, %v906_v24  ;;  %v987_v27 = vpop.f32.mrb[9].mxu1  ;;  %v4328_v18 = vld [vmem:[%s6474_s23 + $0x10] sm:$0xff] }
 0x23c   :  { %v988_v28 = vadd.f32 %v4293_v20, %v987_v27  ;;  %v2032_v20 = vsel %vm76_vm0, %v4329_v16, 0.0  ;;  %v2029_v21 = vsel %vm76_vm0, %v4328_v18, 0.0 }
 0x23d   :  { %v5235_v29 = vpack.c.bf16 %v912_v22, %v907_v26 }
 0x23e   :  { %v5239_v31 = vpack.c.bf16 %v993_v25, %v988_v28 }
 0x23f   :  { %5236 = vmatprep.subr.bf16.mxu0 %v5235_v29 }
 0x240   :  { %4849 = vmatmul.mubr.msk.f32.vlgmr.msra.gmra.mrb[14].mxu0 %vm1158_vm1, %v426_v30  ;;  %5240 = vmatprep.subr.bf16.mxu1 %v5239_v31 }
 0x241   :  { %4856 = vmatmul.mubr.msk.f32.vlgmr.msra.gmra.mrb[14].mxu1 %vm1158_vm1, %v507_v32  ;;  %5238 = vmatpush3.bf16.msra.mxu0 %v5235_v29  ;;  %v4818_v35 = vpop.f32.mrb[10].mxu0 }
 0x242   :  { %5242 = vmatpush3.bf16.msra.mxu1 %v5239_v31  ;;  %v1074_v36 = vadd.f32 %v4818_v35, %v4296_v33  ;;  %v4829_v37 = vpop.f32.mrb[10].mxu1  ;;  %v1068_v38 = vpop.f32.mrb[11].mxu0 }
 0x243   :  { %v1155_v39 = vadd.f32 %v4829_v37, %v4299_v34  ;;  %v1069_v40 = vadd.f32 %v4296_v33, %v1068_v38  ;;  %v1149_v41 = vpop.f32.mrb[11].mxu1 }
 0x244   :  { %v1150_v42 = vadd.f32 %v4299_v34, %v1149_v41 }
 0x245   :  { %v5906_v43 = vpack.c.bf16 %v1074_v36, %v1069_v40 }
 0x246   :  { %v5908_v45 = vpack.c.bf16 %v1155_v39, %v1150_v42 }
 0x247   :  { %5244 = vmatprep.subr.bf16.mxu0 %v5906_v43 }
 0x248   :  { %5248 = vmatprep.subr.bf16.mxu1 %v5908_v45 }
 0x30a   :  { %v4836_v48 = vpop.f32.mrb[12].mxu0 }
 0x30b   :  { %v1508_v49 = vmul.f32 0.35355338, %v4836_v48  ;;  %v4843_v50 = vpop.f32.mrb[12].mxu1  ;;  %v1237_v52 = vpop.f32.mrb[13].mxu0 }
 0x30c   :  { %v1510_v53 = vmul.f32 0.35355338, %v4843_v50  ;;  %v1507_v54 = vmul.f32 0.35355338, %v1237_v52  ;;  %v1324_v55 = vpop.f32.mrb[13].mxu1 }
 0x30d   :  { %v1509_v56 = vmul.f32 0.35355338, %v1324_v55  ;;  %v1522_v57 = vsel %vm1516_vm3, -1e+09, %v1508_v49 }
 0x30e   :  { %v1533_v58 = vsel %vm1529_vm4, %v1522_v57, -inf  ;;  %v1521_v59 = vsel %vm1515_vm5, -1e+09, %v1507_v54  ;;  %v1524_v61 = vsel %vm1516_vm3, -1e+09, %v1510_v53 }
 0x30f   :  { %1534 = vmax.xlane.f32.xlu1 %v1533_v58  ;;  %v1530_v60 = vsel %vm1529_vm4, %v1521_v59, -inf  ;;  %v1523_v63 = vsel %vm1515_vm5, -1e+09, %v1509_v56  ;;  %v1539_v0 = vsel %vm1529_vm4, %v1524_v61, -inf }
 0x310   :  { %1531 = vmax.xlane.f32.xlu0 %v1530_v60  ;;  %v1536_v2 = vsel %vm1529_vm4, %v1523_v63, -inf }
 0x313   :  { %v4850_v1 = vpop.f32.mrb[14].mxu0  ;;  %1540 = vmax.xlane.f32.xlu1 %v1539_v0 }
 0x314   :  { %v1512_v3 = vmul.f32 0.35355338, %v4850_v1  ;;  %v4857_v4 = vpop.f32.mrb[14].mxu1  ;;  %v1411_v5 = vpop.f32.mrb[15].mxu0  ;;  %1537 = vmax.xlane.f32.xlu0 %v1536_v2 }
 0x315   :  { %v1514_v6 = vmul.f32 0.35355338, %v4857_v4  ;;  %v1498_v7 = vpop.f32.mrb[15].mxu1  ;;  %v1511_v8 = vmul.f32 0.35355338, %v1411_v5 }
 0x316   :  { %v1513_v9 = vmul.f32 0.35355338, %v1498_v7  ;;  %v1526_v10 = vsel %vm1516_vm3, -1e+09, %v1512_v3 }
 0x317   :  { %v1545_v11 = vsel %vm1529_vm4, %v1526_v10, -inf  ;;  %v1525_v12 = vsel %vm1515_vm5, -1e+09, %v1511_v8  ;;  %v1528_v14 = vsel %vm1516_vm3, -1e+09, %v1514_v6 }
 0x318   :  { %1546 = vmax.xlane.f32.xlu1 %v1545_v11  ;;  %v1542_v13 = vsel %vm1529_vm4, %v1525_v12, -inf  ;;  %v1527_v15 = vsel %vm1515_vm5, -1e+09, %v1513_v9  ;;  %v1551_v17 = vsel %vm1529_vm4, %v1528_v14, -inf }
 0x319   :  { %1543 = vmax.xlane.f32.xlu0 %v1542_v13  ;;  %v1548_v19 = vsel %vm1529_vm4, %v1527_v15, -inf }
 0x31c   :  { %1552 = vmax.xlane.f32.xlu1 %v1551_v17 }
 0x31d   :  { %1549 = vmax.xlane.f32.xlu0 %v1548_v19 }
 0x320   :  { %2033 = vadd.xlane.f32.xlu1 %v2032_v20 }
 0x321   :  { %2030 = vadd.xlane.f32.xlu0 %v2029_v21 }
 0x39c   :  { %v1535_v22 = vpop.xlane.xlu1 %1534 }
 0x39d   :  { %v1532_v23 = vpop.xlane.xlu0 %1531  ;;  %v1555_v29 = vsub.f32 %v1522_v57, %v1535_v22 }
 0x39e   :  { %v1554_v24 = vsub.f32 %v1521_v59, %v1532_v23 }
 0x39f   :  { %v1564_v34 = vmul.f32 1.442695, %v1555_v29 }
 0x3a0   :  { %v1562_v25 = vmul.f32 1.442695, %v1554_v24  ;;  %v1541_v26 = vpop.xlane.xlu1 %1540 }
 0x3a1   :  { %v1538_v27 = vpop.xlane.xlu0 %1537  ;;  %v1557_v36 = vsub.f32 %v1524_v61, %v1541_v26 }
 0x3a2   :  { %5430 = vpow2.f32 %v1562_v25  ;;  %v1556_v28 = vsub.f32 %v1523_v63, %v1538_v27 }
 0x3a3   :  { %v1568_v42 = vmul.f32 1.442695, %v1557_v36 }
 0x3a4   :  { %v1566_v30 = vmul.f32 1.442695, %v1556_v28 }
 0x3a5   :  { %v1547_v31 = vpop.xlane.xlu1 %1546 }
 0x3a6   :  { %5432 = vpow2.f32 %v1566_v30  ;;  %v1559_v32 = vsub.f32 %v1526_v10, %v1547_v31  ;;  %v1544_v33 = vpop.xlane.xlu0 %1543  ;;  %v4334_v30 = vld [vmem:[%s6459_s4 + $0x80] sm:$0xff]  ;;  %v4335_v31 = vld [vmem:[%s6459_s4 + $0x88] sm:$0xff] }
 0x3a7   :  { %v1558_v35 = vsub.f32 %v1525_v12, %v1544_v33  ;;  %v4332_v33 = vld [vmem:[%s6457_s2 + $0x1] ss:$0 sm:$0xff] }
 0x3a8   :  { %v1572_v37 = vmul.f32 1.442695, %v1559_v32 }
 0x3a9   :  { %v1570_v38 = vmul.f32 1.442695, %v1558_v35  ;;  %v1553_v39 = vpop.xlane.xlu1 %1552 }
 0x3aa   :  { %5434 = vpow2.f32 %v1572_v37  ;;  %v1550_v40 = vpop.xlane.xlu0 %1549  ;;  %v1561_v54 = vsub.f32 %v1528_v14, %v1553_v39 }
 0x3ab   :  { %5436 = vpow2.f32 %v1564_v34  ;;  %v1560_v46 = vsub.f32 %v1527_v15, %v1550_v40  ;;  %v5251_v40 = vpack.c.bf16 %v4335_v31, %v4334_v30  ;;  %v4364_v30 = vld [vmem:[%s6461_s6 + $0xd0] sm:$0xff]  ;;  %v4365_v31 = vld [vmem:[%s6461_s6 + $0xd8] sm:$0xff] }
 0x3ac   :  { %v5431_v41 = vpop.eup %5430  ;;  %5438 = vpow2.f32 %v1570_v38  ;;  %v1576_v61 = vmul.f32 1.442695, %v1561_v54  ;;  %v4333_v38 = vld [vmem:[%s6458_s3 + $0x1] ss:$0 sm:$0xff] }
 0x3ad   :  { %v1578_v47 = vsel %vm1529_vm4, %v5431_v41, 0.0  ;;  %v2034_v48 = vpop.xlane.xlu1 %2033  ;;  %5440 = vpow2.f32 %v1568_v42  ;;  %v1574_v55 = vmul.f32 1.442695, %v1560_v46 }
 0x3ae   :  { %v2031_v49 = vpop.xlane.xlu0 %2030  ;;  %1579 = vadd.xlane.f32.xlu0 %v1578_v47  ;;  %v2036_v52 = vmul.f32 0.03125, %v2034_v48  ;;  %v4337_v48 = vld [vmem:[%s6459_s4 + $0x98] sm:$0xff] }
 0x3af   :  { %v2035_v50 = vmul.f32 0.03125, %v2031_v49  ;;  %5442 = vpow2.f32 %v1574_v55  ;;  %v4338_v49 = vld [vmem:[%s6459_s4 + $0xa0] sm:$0xff] }
 0x3b0   :  { %v5433_v53 = vpop.eup %5432  ;;  %v5948_v59 = vsub.f32 %v4329_v16, %v2036_v52  ;;  %5444 = vpow2.f32 %v1576_v61  ;;  %v4343_v61 = vld [vmem:[%s6459_s4 + $0xc8] sm:$0xff] }
 0x3b1   :  { %v5943_v56 = vsub.f32 %v4328_v18, %v2035_v50  ;;  %v1584_v57 = vsel %vm1529_vm4, %v5433_v53, 0.0  ;;  %v4339_v50 = vld [vmem:[%s6459_s4 + $0xa8] sm:$0xff] }
 0x3b2   :  { %1585 = vadd.xlane.f32.xlu0 %v1584_v57  ;;  %v2040_v3 = vmul.f32 %v5948_v59, %v5948_v59  ;;  %v5259_v57 = vpack.c.bf16 %v4339_v50, %v4338_v49  ;;  %v4379_v49 = vld [vmem:[%s6463_s8 + $0xa8] sm:$0xff] }
 0x3b3   :  { %v2039_v58 = vmul.f32 %v5943_v56, %v5943_v56 }
 0x3b4   :  { %v5950_v60 = vpop.eup %5434  ;;  %v2044_v7 = vsel %vm76_vm0, %v2040_v3, 0.0  ;;  %v4340_v3 = vld [vmem:[%s6459_s4 + $0xb0] sm:$0xff] }
 0x3b5   :  { %v5437_v63 = vpop.eup %5436  ;;  %v2041_v0 = vsel %vm76_vm0, %v2039_v58, 0.0  ;;  %v1593_v1 = vsel %vm1529_vm4, %v5950_v60, 0.0  ;;  %v4342_v58 = vld [vmem:[%s6459_s4 + $0xc0] sm:$0xff] }
 0x3b6   :  { %v5955_v2 = vpop.eup %5438  ;;  %2042 = vadd.xlane.f32.xlu1 %v2041_v0  ;;  %1594 = vadd.xlane.f32.xlu0 %v1593_v1  ;;  %v1581_v4 = vsel %vm1529_vm4, %v5437_v63, 0.0  ;;  %v5267_v1 = vpack.c.bf16 %v4343_v61, %v4342_v58  ;;  %v4381_v58 = vld [vmem:[%s6463_s8 + $0xb8] sm:$0xff]  ;;  %v4384_v61 = vld [vmem:[%s6463_s8 + $0xd0] sm:$0xff] }
 0x3b7   :  { %v1590_v5 = vsel %vm1529_vm4, %v5955_v2, 0.0  ;;  %v5962_v6 = vpop.eup %5440 }
 0x3b8   :  { %v1587_v8 = vsel %vm1529_vm4, %v5962_v6, 0.0 }
 0x3b9   :  { %v5967_v9 = vpop.eup %5442 }
 0x3ba   :  { %1582 = vadd.xlane.f32.xlu1 %v1581_v4  ;;  %1591 = vadd.xlane.f32.xlu0 %v1590_v5  ;;  %v1596_v10 = vsel %vm1529_vm4, %v5967_v9, 0.0  ;;  %v5971_v11 = vpop.eup %5444  ;;  %v4345_v5 = vld [vmem:[%s6459_s4 + $0xd8] sm:$0xff] }
 0x3bb   :  { %v1599_v12 = vsel %vm1529_vm4, %v5971_v11, 0.0 }
 0x3be   :  { %1588 = vadd.xlane.f32.xlu1 %v1587_v8  ;;  %2045 = vadd.xlane.f32.xlu0 %v2044_v7 }
 0x3c2   :  { %1597 = vadd.xlane.f32.xlu1 %v1596_v10  ;;  %v4347_v10 = vld [vmem:[%s6459_s4 + $0xe8] sm:$0xff] }
 0x3c6   :  { %1600 = vadd.xlane.f32.xlu1 %v1599_v12 }
 0x43b   :  { %v1580_v13 = vpop.xlane.xlu0 %1579 }
 0x43c   :  { %5446 = vrcp.f32 %v1580_v13  ;;  %v4354_v13 = vld [vmem:[%s6461_s6 + $0x80] sm:$0xff] }
 0x43f   :  { %v1586_v14 = vpop.xlane.xlu0 %1585 }
 0x440   :  { %5448 = vrcp.f32 %v1586_v14 }
 0x443   :  { %v2043_v15 = vpop.xlane.xlu1 %2042  ;;  %v1595_v16 = vpop.xlane.xlu0 %1594 }
 0x444   :  { %v2047_v17 = vmul.f32 0.03125, %v2043_v15 }
 0x446   :  { %v5447_v18 = vpop.eup %5446  ;;  %v2049_v19 = vadd.f32 1e-05, %v2047_v17  ;;  %v4349_v17 = vld [vmem:[%s6459_s4 + $0xf8] sm:$0xff] }
 0x447   :  { %v1583_v20 = vpop.xlane.xlu1 %1582  ;;  %v1592_v21 = vpop.xlane.xlu0 %1591  ;;  %v1610_v22 = vmul.f32 %v5447_v18, %v5431_v41  ;;  %v4336_v41 = vld [vmem:[%s6459_s4 + $0x90] sm:$0xff] }
 0x448   :  { %5450 = vrsqrt.f32 %v2049_v19  ;;  %v4356_v18 = vld [vmem:[%s6461_s6 + $0x90] sm:$0xff]  ;;  %v4357_v19 = vld [vmem:[%s6461_s6 + $0x98] sm:$0xff] }
 0x449   :  { %5452 = vrcp.f32 %v1583_v20  ;;  %4862 = vmatprep.mubr.msk.f32.mxu0 %vm1529_vm4, %v1610_v22  ;;  %v4359_v22 = vld [vmem:[%s6461_s6 + $0xa8] sm:$0xff] }
 0x44a   :  { %v5449_v23 = vpop.eup %5448  ;;  %5454 = vrcp.f32 %v1592_v21  ;;  %v4358_v21 = vld [vmem:[%s6461_s6 + $0xa0] sm:$0xff] }
 0x44b   :  { %5456 = vrcp.f32 %v1595_v16  ;;  %v1589_v24 = vpop.xlane.xlu1 %1588  ;;  %v2046_v25 = vpop.xlane.xlu0 %2045  ;;  %v1612_v26 = vmul.f32 %v5449_v23, %v5433_v53  ;;  %v4348_v16 = vld [vmem:[%s6459_s4 + $0xf0] sm:$0xff]  ;;  %v5287_v23 = vpack.c.bf16 %v4357_v19, %v4356_v18 }
 0x44c   :  { %5458 = vrcp.f32 %v1589_v24  ;;  %v2048_v27 = vmul.f32 0.03125, %v2046_v25  ;;  %v5279_v20 = vpack.c.bf16 %v4349_v17, %v4348_v16  ;;  %v4362_v24 = vld [vmem:[%s6461_s6 + $0xc0] sm:$0xff]  ;;  %v4363_v25 = vld [vmem:[%s6461_s6 + $0xc8] sm:$0xff] }
 0x44d   :  { %4869 = vmatprep.mubr.msk.f32.mxu1 %vm1529_vm4, %v1612_v26  ;;  %v5291_v26 = vpack.c.bf16 %v4359_v22, %v4358_v21  ;;  %v4397_v17 = vld [vmem:[%s6460_s5 + $0x5] ss:$0 sm:$0xff] }
 0x44e   :  { %v2050_v28 = vadd.f32 1e-05, %v2048_v27  ;;  %v5299_v27 = vpack.c.bf16 %v4363_v25, %v4362_v24 }
 0x44f   :  { %v1598_v29 = vpop.xlane.xlu1 %1597 }
 0x450   :  { %5460 = vrsqrt.f32 %v2050_v28  ;;  %v4360_v28 = vld [vmem:[%s6461_s6 + $0xb0] sm:$0xff] }
 0x451   :  { %5462 = vrcp.f32 %v1598_v29  ;;  %v4361_v29 = vld [vmem:[%s6461_s6 + $0xb8] sm:$0xff] }
 0x452   :  { %v5451_v32 = vpop.eup %5450 }
 0x453   :  { %v5453_v34 = vpop.eup %5452  ;;  %v2053_v35 = vmul.f32 %v5451_v32, %v5943_v56  ;;  %v1601_v36 = vpop.xlane.xlu1 %1600  ;;  %v5255_v56 = vpack.c.bf16 %v4337_v48, %v4336_v41  ;;  %v5295_v32 = vpack.c.bf16 %v4361_v29, %v4360_v28  ;;  %v4369_v41 = vld [vmem:[%s6461_s6 + $0xf8] sm:$0xff]  ;;  %v4378_v48 = vld [vmem:[%s6463_s8 + $0xa0] sm:$0xff] }
 0x454   :  { %v5455_v37 = vpop.eup %5454  ;;  %v1611_v39 = vmul.f32 %v5453_v34, %v5437_v63  ;;  %5464 = vrcp.f32 %v1601_v36  ;;  %v4367_v34 = vld [vmem:[%s6461_s6 + $0xe8] sm:$0xff]  ;;  %v4374_v36 = vld [vmem:[%s6463_s8 + $0x80] sm:$0xff] }
 0x455   :  { %v5457_v42 = vpop.eup %5456  ;;  %v2061_v46 = vmul.f32 %v4332_v33, %v2053_v35  ;;  %v1614_v47 = vmul.f32 %v5455_v37, %v5955_v2  ;;  %v5303_v35 = vpack.c.bf16 %v4365_v31, %v4364_v30  ;;  %v4375_v37 = vld [vmem:[%s6463_s8 + $0x88] sm:$0xff]  ;;  %v4409_v31 = vld [vmem:[%s6462_s7 + $0x5] ss:$0 sm:$0xff] }
 0x456   :  { %v5459_v52 = vpop.eup %5458  ;;  %4863 = vmatmul.mubr.msk.f32.vlgmr.msra.gmra.mrb[16].mxu0 %vm1529_vm4, %v1611_v39  ;;  %v1615_v55 = vmul.f32 %v5457_v42, %v5950_v60  ;;  %v5315_v39 = vpack.c.bf16 %v4375_v37, %v4374_v36  ;;  %v4376_v42 = vld [vmem:[%s6463_s8 + $0x90] sm:$0xff] }
 0x457   :  { %v6004_v53 = vadd.f32 %v4333_v38, %v2061_v46  ;;  %v1613_v54 = vmul.f32 %v5459_v52, %v5962_v6  ;;  %5246 = vmatpush3.bf16.msra.mxu0 %v5906_v43  ;;  %4876 = vmatprep.mubr.msk.f32.mxu0 %vm1529_vm4, %v1614_v47  ;;  %v4377_v46 = vld [vmem:[%s6463_s8 + $0x98] sm:$0xff]  ;;  %v4382_v52 = vld [vmem:[%s6463_s8 + $0xc0] sm:$0xff] }
 0x458   :  { %5252 = vmatprep.subr.bf16.mxu0 %v5251_v40  ;;  %v5319_v50 = vpack.c.bf16 %v4377_v46, %v4376_v42 }
 0x459   :  { %4870 = vmatmul.mubr.msk.f32.vlgmr.msra.gmra.mrb[16].mxu1 %vm1529_vm4, %v1613_v54  ;;  %v4383_v54 = vld [vmem:[%s6463_s8 + $0xc8] sm:$0xff] }
 0x45a   :  { %v5461_v63 = vpop.eup %5460  ;;  %4877 = vmatmul.mubr.msk.f32.vlgmr.msra.gmra.mrb[18].mxu0 %vm1529_vm4, %v1615_v55  ;;  %5250 = vmatpush3.bf16.msra.mxu1 %v5908_v45  ;;  %v4341_v45 = vld [vmem:[%s6459_s4 + $0xb8] sm:$0xff]  ;;  %v5323_v55 = vpack.c.bf16 %v4379_v49, %v4378_v48  ;;  %v4415_v49 = vld [vmem:[%s6462_s7 + $0x7] ss:$0 sm:$0xff] }
 0x45b   :  { %v5463_v43 = vpop.eup %5462  ;;  %v2054_v60 = vmul.f32 %v5461_v63, %v5948_v59  ;;  %5254 = vmatpush3.bf16.msra.mxu0 %v5251_v40  ;;  %4894 = vmatprep.mubr.msk.f32.mxu0 %vm76_vm0, %v6004_v53  ;;  %v4344_v59 = vld [vmem:[%s6459_s4 + $0xd0] sm:$0xff]  ;;  %v5263_v8 = vpack.c.bf16 %v4341_v45, %v4340_v3  ;;  %v4385_v63 = vld [vmem:[%s6463_s8 + $0xd8] sm:$0xff] }
 0x45c   :  { %v1616_v0 = vmul.f32 %v5463_v43, %v5967_v9  ;;  %5256 = vmatprep.subr.bf16.mxu0 %v5255_v56  ;;  %5260 = vmatprep.subr.bf16.mxu1 %v5259_v57  ;;  %v4346_v9 = vld [vmem:[%s6459_s4 + $0xe0] sm:$0xff]  ;;  %v5271_v12 = vpack.c.bf16 %v4345_v5, %v4344_v59  ;;  %v4368_v40 = vld [vmem:[%s6461_s6 + $0xf0] sm:$0xff]  ;;  %v4389_v45 = vld [vmem:[%s6463_s8 + $0xf8] sm:$0xff] }
 0x45d   :  { %v2062_v2 = vmul.f32 %v4332_v33, %v2054_v60  ;;  %v5275_v14 = vpack.c.bf16 %v4347_v10, %v4346_v9  ;;  %v4366_v33 = vld [vmem:[%s6461_s6 + $0xe0] sm:$0xff]  ;;  %v5311_v47 = vpack.c.bf16 %v4369_v41, %v4368_v40  ;;  %v4388_v3 = vld [vmem:[%s6463_s8 + $0xf0] sm:$0xff] }
 0x45e   :  { %v5465_v4 = vpop.eup %5464  ;;  %4883 = vmatprep.mubr.msk.f32.mxu1 %vm1529_vm4, %v1616_v0  ;;  %v4386_v60 = vld [vmem:[%s6463_s8 + $0xe0] sm:$0xff]  ;;  %v4387_v0 = vld [vmem:[%s6463_s8 + $0xe8] sm:$0xff] }
 0x45f   :  { %v6036_v6 = vadd.f32 %v4333_v38, %v2062_v2  ;;  %v1617_v7 = vmul.f32 %v5465_v4, %v5971_v11  ;;  %5258 = vmatpush3.bf16.msra.mxu0 %v5255_v56  ;;  %v4355_v11 = vld [vmem:[%s6461_s6 + $0x88] sm:$0xff]  ;;  %v5307_v38 = vpack.c.bf16 %v4367_v34, %v4366_v33  ;;  %v5331_v56 = vpack.c.bf16 %v4383_v54, %v4382_v52  ;;  %v4400_v40 = vld [vmem:[%s6460_s5 + $0x6] ss:$0 sm:$0xff] }
 0x460   :  { %5268 = vmatprep.subr.bf16.mxu0 %v5267_v1  ;;  %v5283_v15 = vpack.c.bf16 %v4355_v11, %v4354_v13  ;;  %v5339_v2 = vpack.c.bf16 %v4387_v0, %v4386_v60  ;;  %v5343_v4 = vpack.c.bf16 %v4389_v45, %v4388_v3  ;;  %v4394_v13 = vld [vmem:[%s6460_s5 + $0x4] ss:$0 sm:$0xff]  ;;  %v4421_v45 = vld [vmem:[%s6464_s9 + $0x5] ss:$0 sm:$0xff] }
 0x461   :  { %4884 = vmatmul.mubr.msk.f32.vlgmr.msra.gmra.mrb[18].mxu1 %vm1529_vm4, %v1617_v7 }
 0x462   :  { %5262 = vmatpush3.bf16.msra.mxu1 %v5259_v57  ;;  %4895 = vmatmul.mubr.msk.f32.vlgmr.msra.gmra.mrb[20].mxu0 %vm76_vm0, %v6036_v6  ;;  %v4380_v57 = vld [vmem:[%s6463_s8 + $0xb0] sm:$0xff] }
 0x463   :  { %4905 = vmatprep.mubr.msk.f32.mxu1 %vm76_vm0, %v6004_v53  ;;  %5270 = vmatpush3.bf16.msra.mxu0 %v5267_v1  ;;  %v5327_v43 = vpack.c.bf16 %v4381_v58, %v4380_v57  ;;  %v5335_v1 = vpack.c.bf16 %v4385_v63, %v4384_v61  ;;  %v4403_v57 = vld [vmem:[%s6460_s5 + $0x7] ss:$0 sm:$0xff] }
 0x464   :  { %4916 = vmatprep.mubr.msk.f32.mxu0 %vm76_vm0, %v6004_v53  ;;  %5264 = vmatprep.subr.bf16.mxu1 %v5263_v8 }
 0x465   :  { %5272 = vmatprep.subr.bf16.mxu0 %v5271_v12 }
 0x466   :  { %5266 = vmatpush3.bf16.msra.mxu1 %v5263_v8 }
 0x467   :  { %5274 = vmatpush3.bf16.msra.mxu0 %v5271_v12  ;;  %5276 = vmatprep.subr.bf16.mxu1 %v5275_v14 }
 0x468   :  { %5284 = vmatprep.subr.bf16.mxu0 %v5283_v15 }
 0x469   :  { %4906 = vmatmul.mubr.msk.f32.vlgmr.msra.gmra.mrb[20].mxu1 %vm76_vm0, %v6036_v6 }
 0x46a   :  { %4917 = vmatmul.mubr.msk.f32.vlgmr.msra.gmra.mrb[22].mxu0 %vm76_vm0, %v6036_v6  ;;  %5278 = vmatpush3.bf16.msra.mxu1 %v5275_v14 }
 0x46b   :  { %4927 = vmatprep.mubr.msk.f32.mxu1 %vm76_vm0, %v6004_v53  ;;  %5286 = vmatpush3.bf16.msra.mxu0 %v5283_v15 }
 0x46c   :  { %4938 = vmatprep.mubr.msk.f32.mxu0 %vm76_vm0, %v6004_v53  ;;  %5280 = vmatprep.subr.bf16.mxu1 %v5279_v20 }
 0x46d   :  { %5288 = vmatprep.subr.bf16.mxu0 %v5287_v23 }
 0x46e   :  { %5282 = vmatpush3.bf16.msra.mxu1 %v5279_v20 }
 0x46f   :  { %5290 = vmatpush3.bf16.msra.mxu0 %v5287_v23  ;;  %5292 = vmatprep.subr.bf16.mxu1 %v5291_v26  ;;  %v4406_v23 = vld [vmem:[%s6462_s7 + $0x4] ss:$0 sm:$0xff] }
 0x470   :  { %5300 = vmatprep.subr.bf16.mxu0 %v5299_v27 }
 0x471   :  { %4928 = vmatmul.mubr.msk.f32.vlgmr.msra.gmra.mrb[22].mxu1 %vm76_vm0, %v6036_v6 }
 0x472   :  { %4939 = vmatmul.mubr.msk.f32.vlgmr.msra.gmra.mrb[24].mxu0 %vm76_vm0, %v6036_v6  ;;  %5294 = vmatpush3.bf16.msra.mxu1 %v5291_v26 }
 0x473   :  { %4949 = vmatprep.mubr.msk.f32.mxu1 %vm76_vm0, %v6004_v53  ;;  %5302 = vmatpush3.bf16.msra.mxu0 %v5299_v27 }
 0x474   :  { %4960 = vmatprep.mubr.msk.f32.mxu0 %vm76_vm0, %v6004_v53  ;;  %5296 = vmatprep.subr.bf16.mxu1 %v5295_v32 }
 0x475   :  { %5304 = vmatprep.subr.bf16.mxu0 %v5303_v35 }
 0x476   :  { %5298 = vmatpush3.bf16.msra.mxu1 %v5295_v32  ;;  %v4412_v32 = vld [vmem:[%s6462_s7 + $0x6] ss:$0 sm:$0xff] }
 0x477   :  { %5306 = vmatpush3.bf16.msra.mxu0 %v5303_v35  ;;  %5308 = vmatprep.subr.bf16.mxu1 %v5307_v38 }
 0x478   :  { %5316 = vmatprep.subr.bf16.mxu0 %v5315_v39 }
 0x479   :  { %4950 = vmatmul.mubr.msk.f32.vlgmr.msra.gmra.mrb[24].mxu1 %vm76_vm0, %v6036_v6 }
 0x47a   :  { %4961 = vmatmul.mubr.msk.f32.vlgmr.msra.gmra.mrb[26].mxu0 %vm76_vm0, %v6036_v6  ;;  %5310 = vmatpush3.bf16.msra.mxu1 %v5307_v38 }
 0x47b   :  { %4971 = vmatprep.mubr.msk.f32.mxu1 %vm76_vm0, %v6004_v53  ;;  %5318 = vmatpush3.bf16.msra.mxu0 %v5315_v39 }
 0x47c   :  { %4982 = vmatprep.mubr.msk.f32.mxu0 %vm76_vm0, %v6004_v53  ;;  %5312 = vmatprep.subr.bf16.mxu1 %v5311_v47 }
 0x47d   :  { %5320 = vmatprep.subr.bf16.mxu0 %v5319_v50 }
 0x47e   :  { %5314 = vmatpush3.bf16.msra.mxu1 %v5311_v47 }
 0x47f   :  { %5322 = vmatpush3.bf16.msra.mxu0 %v5319_v50  ;;  %5324 = vmatprep.subr.bf16.mxu1 %v5323_v55  ;;  %v4418_v50 = vld [vmem:[%s6464_s9 + $0x4] ss:$0 sm:$0xff] }
 0x480   :  { %5332 = vmatprep.subr.bf16.mxu0 %v5331_v56 }
 0x481   :  { %4972 = vmatmul.mubr.msk.f32.vlgmr.msra.gmra.mrb[26].mxu1 %vm76_vm0, %v6036_v6 }
 0x482   :  { %4983 = vmatmul.mubr.msk.f32.vlgmr.msra.gmra.mrb[28].mxu0 %vm76_vm0, %v6036_v6  ;;  %5326 = vmatpush3.bf16.msra.mxu1 %v5323_v55 }
 0x483   :  { %4993 = vmatprep.mubr.msk.f32.mxu1 %vm76_vm0, %v6004_v53  ;;  %5334 = vmatpush3.bf16.msra.mxu0 %v5331_v56 }
 0x484   :  { %5004 = vmatprep.mubr.msk.f32.mxu0 %vm76_vm0, %v6004_v53  ;;  %5328 = vmatprep.subr.bf16.mxu1 %v5327_v43 }
 0x485   :  { %5336 = vmatprep.subr.bf16.mxu0 %v5335_v1 }
 0x486   :  { %5330 = vmatpush3.bf16.msra.mxu1 %v5327_v43 }
 0x487   :  { %5338 = vmatpush3.bf16.msra.mxu0 %v5335_v1  ;;  %5340 = vmatprep.subr.bf16.mxu1 %v5339_v2 }
 0x489   :  { %4994 = vmatmul.mubr.msk.f32.vlgmr.msra.gmra.mrb[28].mxu1 %vm76_vm0, %v6036_v6 }
 0x48a   :  { %5005 = vmatmul.mubr.msk.f32.vlgmr.msra.gmra.mrb[30].mxu0 %vm76_vm0, %v6036_v6  ;;  %5342 = vmatpush3.bf16.msra.mxu1 %v5339_v2 }
 0x48b   :  { %5015 = vmatprep.mubr.msk.f32.mxu1 %vm76_vm0, %v6004_v53  ;;  %5344 = vmatprep.subr.bf16.mxu1 %v5343_v4 }
 0x48e   :  { %5346 = vmatpush3.bf16.msra.mxu1 %v5343_v4  ;;  %v4424_v4 = vld [vmem:[%s6464_s9 + $0x6] ss:$0 sm:$0xff] }
 0x491   :  { %5016 = vmatmul.mubr.msk.f32.vlgmr.msra.gmra.mrb[30].mxu1 %vm76_vm0, %v6036_v6 }
 0x529   :  { %v6194_v59 = vpop.f32.mrb[16].mxu0 }
 0x52a   :  { %v6196_v5 = vpop.f32.mrb[17].mxu0 }
 0x52c   :  { %v6198_v7 = vpop.f32.mrb[16].mxu1 }
 0x52d   :  { %v6200_v8 = vpop.f32.mrb[18].mxu0  ;;  %v6202_v9 = vpop.f32.mrb[17].mxu1 }
 0x52e   :  { %v6204_v10 = vpop.f32.mrb[19].mxu0 }
 0x534   :  { %v6206_v12 = vpop.f32.mrb[18].mxu1 }
 0x535   :  { %v6211_v11 = vpop.f32.mrb[19].mxu1  ;;  %v4896_v14 = vpop.f32.mrb[20].mxu0 }
 0x536   :  { %v2215_v15 = vpop.f32.mrb[21].mxu0  ;;  %v2221_v46 = vadd.f32 %v4896_v14, %v4394_v13 }
 0x537   :  { %v2216_v16 = vadd.f32 %v4394_v13, %v2215_v15 }
 0x539   :  { %5022 = vmatprep.mubr.msk.f32.mxu0 %vm1158_vm1, %v2216_v16 }
 0x53c   :  { %v4907_v18 = vpop.f32.mrb[20].mxu1 }
 0x53d   :  { %v2296_v19 = vpop.f32.mrb[21].mxu1  ;;  %v4918_v20 = vpop.f32.mrb[22].mxu0  ;;  %v2302_v60 = vadd.f32 %v4907_v18, %v4397_v17 }
 0x53e   :  { %v2297_v21 = vadd.f32 %v4397_v17, %v2296_v19  ;;  %v2377_v22 = vpop.f32.mrb[23].mxu0  ;;  %v2383_v3 = vadd.f32 %v4918_v20, %v4400_v40 }
 0x53f   :  { %v2378_v48 = vadd.f32 %v4400_v40, %v2377_v22 }
 0x540   :  { %5029 = vmatprep.mubr.msk.f32.mxu1 %vm1158_vm1, %v2297_v21 }
 0x544   :  { %v6221_v24 = vpop.f32.mrb[22].mxu1 }
 0x545   :  { %v2458_v25 = vpop.f32.mrb[23].mxu1  ;;  %v4940_v26 = vpop.f32.mrb[24].mxu0  ;;  %v2464_v62 = vadd.f32 %v6221_v24, %v4403_v57  ;;  %v4331_v24 = vld [vmem:[%s6456_s1 + $0x18] sm:$0xff] }
 0x546   :  { %v2545_v27 = vadd.f32 %v4940_v26, %v4406_v23  ;;  %v2539_v28 = vpop.f32.mrb[25].mxu0  ;;  %v2459_v1 = vadd.f32 %v4403_v57, %v2458_v25  ;;  %vm3472_vm6 = vcmp.eq.f32.partialorder %v4331_v24, 0.0 }
 0x547   :  { %v2540_v29 = vadd.f32 %v4406_v23, %v2539_v28  ;;  %v4427_v23 = vld [vmem:[%s6464_s9 + $0x7] ss:$0 sm:$0xff]  ;;  %s5539_s9 = smov 16  }
 0x549   :  { %v5347_v30 = vpack.c.bf16 %v2545_v27, %v2540_v29 }
 0x54b   :  { %5349 = vmatprep.subr.msk.bf16.mxu0 %vm5856_vm2, %v5347_v30 }
 0x54c   :  { %v4951_v33 = vpop.f32.mrb[24].mxu1  ;;  %5352 = vmatpush3.bf16.xpose.msk.msra.mxu0 %vm5856_vm2, %v5347_v30  ;;  %v4330_v30 = vld [vmem:[%s6456_s1 + $0x10] sm:$0xff]  ;;  %s5538_s1 = smov 8  }
 0x54d   :  { %v2626_v34 = vadd.f32 %v4951_v33, %v4409_v31  ;;  %v2620_v35 = vpop.f32.mrb[25].mxu1  ;;  %v4962_v36 = vpop.f32.mrb[26].mxu0  ;;  %vm3471_vm7 = vcmp.eq.f32.partialorder %v4330_v30, 0.0 }
 0x54e   :  { %v2621_v37 = vadd.f32 %v4409_v31, %v2620_v35  ;;  %v2707_v38 = vadd.f32 %v4962_v36, %v4412_v32  ;;  %v2701_v39 = vpop.f32.mrb[27].mxu0 }
 0x54f   :  { %v2702_v41 = vadd.f32 %v4412_v32, %v2701_v39 }
 0x550   :  { %v5353_v42 = vpack.c.bf16 %v2626_v34, %v2621_v37 }
 0x551   :  { %v5359_v47 = vpack.c.bf16 %v2707_v38, %v2702_v41 }
 0x552   :  { %5355 = vmatprep.subr.msk.bf16.mxu1 %vm5856_vm2, %v5353_v42 }
 0x553   :  { %5023 = vmatmul.mubr.msk.f32.vlgmr.msra.gmra.mrb[32].mxu0 %vm1158_vm1, %v2221_v46  ;;  %5358 = vmatpush3.bf16.xpose.msk.msra.mxu1 %vm5856_vm2, %v5353_v42 }
 0x554   :  { %5361 = vmatprep.subr.msk.bf16.mxu0 %vm5856_vm2, %v5359_v47  ;;  %v4973_v52 = vpop.f32.mrb[26].mxu1  ;;  %5036 = vmatprep.mubr.msk.f32.mxu0 %vm1158_vm1, %v2378_v48 }
 0x555   :  { %v2788_v54 = vadd.f32 %v4973_v52, %v4415_v49  ;;  %5364 = vmatpush3.bf16.xpose.msk.msra.mxu0 %vm5856_vm2, %v5359_v47  ;;  %v2782_v55 = vpop.f32.mrb[27].mxu1  ;;  %v4984_v56 = vpop.f32.mrb[28].mxu0 }
 0x556   :  { %v2783_v58 = vadd.f32 %v4415_v49, %v2782_v55  ;;  %v2869_v61 = vadd.f32 %v4984_v56, %v4418_v50  ;;  %v2863_v63 = vpop.f32.mrb[29].mxu0 }
 0x557   :  { %v2864_v43 = vadd.f32 %v4418_v50, %v2863_v63 }
 0x558   :  { %v5365_v0 = vpack.c.bf16 %v2788_v54, %v2783_v58 }
 0x559   :  { %v5371_v2 = vpack.c.bf16 %v2869_v61, %v2864_v43 }
 0x55a   :  { %5030 = vmatmul.mubr.msk.f32.vlgmr.msra.gmra.mrb[32].mxu1 %vm1158_vm1, %v2302_v60  ;;  %5367 = vmatprep.subr.msk.bf16.mxu1 %vm5856_vm2, %v5365_v0 }
 0x55b   :  { %5370 = vmatpush3.bf16.xpose.msk.msra.mxu1 %vm5856_vm2, %v5365_v0  ;;  %5043 = vmatprep.mubr.msk.f32.mxu1 %vm1158_vm1, %v2459_v1 }
 0x55c   :  { %5037 = vmatmul.mubr.msk.f32.vlgmr.msra.gmra.mrb[34].mxu0 %vm1158_vm1, %v2383_v3  ;;  %5372 = vmatprep.subr.bf16.mxu0 %v5371_v2  ;;  %v4995_v13 = vpop.f32.mrb[28].mxu1 }
 0x55d   :  { %v2950_v14 = vadd.f32 %v4995_v13, %v4421_v45  ;;  %5374 = vmatpush3.bf16.msra.mxu0 %v5371_v2  ;;  %v2944_v15 = vpop.f32.mrb[29].mxu1  ;;  %v5006_v16 = vpop.f32.mrb[30].mxu0 }
 0x55e   :  { %v2945_v17 = vadd.f32 %v4421_v45, %v2944_v15  ;;  %v3031_v18 = vadd.f32 %v5006_v16, %v4424_v4  ;;  %v3025_v19 = vpop.f32.mrb[31].mxu0 }
 0x55f   :  { %v3026_v20 = vadd.f32 %v4424_v4, %v3025_v19 }
 0x560   :  { %v5375_v21 = vpack.c.bf16 %v2950_v14, %v2945_v17 }
 0x561   :  { %v6269_v22 = vpack.c.bf16 %v3031_v18, %v3026_v20 }
 0x562   :  { %5044 = vmatmul.mubr.msk.f32.vlgmr.msra.gmra.mrb[34].mxu1 %vm1158_vm1, %v2464_v62  ;;  %5376 = vmatprep.subr.bf16.mxu1 %v5375_v21 }
 0x563   :  { %5378 = vmatpush3.bf16.msra.mxu1 %v5375_v21  ;;  %5380 = vmatprep.subr.bf16.mxu0 %v6269_v22 }
 0x564   :  { %v5017_v25 = vpop.f32.mrb[30].mxu1 }
 0x565   :  { %v3112_v26 = vadd.f32 %v5017_v25, %v4427_v23  ;;  %v3106_v27 = vpop.f32.mrb[31].mxu1 }
 0x566   :  { %v3107_v28 = vadd.f32 %v4427_v23, %v3106_v27 }
 0x568   :  { %v6276_v29 = vpack.c.bf16 %v3112_v26, %v3107_v28 }
 0x56a   :  { %5384 = vmatprep.subr.bf16.mxu1 %v6276_v29 }
 0x626   :  { %v5024_v31 = vpop.f32.mrb[32].mxu0 }
 0x627   :  { %v3464_v32 = vmul.f32 0.35355338, %v5024_v31  ;;  %v3193_v33 = vpop.f32.mrb[33].mxu0 }
 0x628   :  { %v3463_v34 = vmul.f32 0.35355338, %v3193_v33 }
 0x629   :  { %v3478_v35 = vsel %vm3472_vm6, -1e+09, %v3464_v32 }
 0x62a   :  { %v3488_v36 = vsel %vm1529_vm4, %v3478_v35, -inf  ;;  %v3477_v37 = vsel %vm3471_vm7, -1e+09, %v3463_v34 }
 0x62b   :  { %3489 = vmax.xlane.f32.xlu1 %v3488_v36  ;;  %v3485_v38 = vsel %vm1529_vm4, %v3477_v37, -inf }
 0x62c   :  { %3486 = vmax.xlane.f32.xlu0 %v3485_v38 }
 0x62d   :  { %v5031_v39 = vpop.f32.mrb[32].mxu1 }
 0x62e   :  { %v3466_v40 = vmul.f32 0.35355338, %v5031_v39  ;;  %v3280_v41 = vpop.f32.mrb[33].mxu1 }
 0x62f   :  { %v3465_v42 = vmul.f32 0.35355338, %v3280_v41  ;;  %v5038_v46 = vpop.f32.mrb[34].mxu0 }
 0x630   :  { %v3468_v47 = vmul.f32 0.35355338, %v5038_v46  ;;  %v3367_v48 = vpop.f32.mrb[35].mxu0  ;;  %v3480_v49 = vsel %vm3472_vm6, -1e+09, %v3466_v40 }
 0x631   :  { %v3467_v50 = vmul.f32 0.35355338, %v3367_v48  ;;  %v3494_v52 = vsel %vm1529_vm4, %v3480_v49, -inf  ;;  %v3479_v54 = vsel %vm3471_vm7, -1e+09, %v3465_v42 }
 0x632   :  { %3495 = vmax.xlane.f32.xlu1 %v3494_v52  ;;  %v3491_v55 = vsel %vm1529_vm4, %v3479_v54, -inf  ;;  %v3482_v56 = vsel %vm3472_vm6, -1e+09, %v3468_v47 }
 0x633   :  { %3492 = vmax.xlane.f32.xlu0 %v3491_v55  ;;  %v3481_v57 = vsel %vm3471_vm7, -1e+09, %v3467_v50  ;;  %v3500_v61 = vsel %vm1529_vm4, %v3482_v56, -inf }
 0x634   :  { %v3497_v60 = vsel %vm1529_vm4, %v3481_v57, -inf }
 0x635   :  { %v5045_v58 = vpop.f32.mrb[34].mxu1 }
 0x636   :  { %v3470_v63 = vmul.f32 0.35355338, %v5045_v58  ;;  %v3454_v43 = vpop.f32.mrb[35].mxu1  ;;  %3501 = vmax.xlane.f32.xlu1 %v3500_v61 }
 0x637   :  { %v3469_v0 = vmul.f32 0.35355338, %v3454_v43  ;;  %3498 = vmax.xlane.f32.xlu0 %v3497_v60 }
 0x638   :  { %v3484_v1 = vsel %vm3472_vm6, -1e+09, %v3470_v63 }
 0x639   :  { %v3506_v2 = vsel %vm1529_vm4, %v3484_v1, -inf  ;;  %v3483_v3 = vsel %vm3471_vm7, -1e+09, %v3469_v0 }
 0x63a   :  { %3507 = vmax.xlane.f32.xlu1 %v3506_v2  ;;  %v3503_v45 = vsel %vm1529_vm4, %v3483_v3, -inf }
 0x63b   :  { %3504 = vmax.xlane.f32.xlu0 %v3503_v45 }
 0x6b8   :  { %v3490_v4 = vpop.xlane.xlu1 %3489 }
 0x6b9   :  { %v3510_v13 = vsub.f32 %v3478_v35, %v3490_v4  ;;  %v3487_v14 = vpop.xlane.xlu0 %3486 }
 0x6ba   :  { %v3509_v15 = vsub.f32 %v3477_v37, %v3487_v14 }
 0x6bb   :  { %v3519_v16 = vmul.f32 1.442695, %v3510_v13 }
 0x6bc   :  { %v3517_v17 = vmul.f32 1.442695, %v3509_v15 }
 0x6bd   :  { %5466 = vpow2.f32 %v3519_v16 }
 0x6be   :  { %5468 = vpow2.f32 %v3517_v17 }
 0x6bf   :  { %v3496_v18 = vpop.xlane.xlu1 %3495 }
 0x6c0   :  { %v3512_v19 = vsub.f32 %v3480_v49, %v3496_v18  ;;  %v3493_v20 = vpop.xlane.xlu0 %3492 }
 0x6c1   :  { %v3511_v62 = vsub.f32 %v3479_v54, %v3493_v20 }
 0x6c2   :  { %v3523_v21 = vmul.f32 1.442695, %v3512_v19 }
 0x6c3   :  { %v3521_v23 = vmul.f32 1.442695, %v3511_v62  ;;  %v3502_v25 = vpop.xlane.xlu1 %3501 }
 0x6c4   :  { %5470 = vpow2.f32 %v3523_v21  ;;  %v3514_v26 = vsub.f32 %v3482_v56, %v3502_v25  ;;  %v3499_v27 = vpop.xlane.xlu0 %3498 }
 0x6c5   :  { %5472 = vpow2.f32 %v3521_v23  ;;  %v3513_v28 = vsub.f32 %v3481_v57, %v3499_v27 }
 0x6c6   :  { %v3527_v24 = vmul.f32 1.442695, %v3514_v26 }
 0x6c7   :  { %v5467_v30 = vpop.eup %5466  ;;  %v3525_v31 = vmul.f32 1.442695, %v3513_v28  ;;  %v3508_v32 = vpop.xlane.xlu1 %3507 }
 0x6c8   :  { %v5469_v33 = vpop.eup %5468  ;;  %5474 = vpow2.f32 %v3527_v24  ;;  %v3516_v34 = vsub.f32 %v3484_v1, %v3508_v32  ;;  %v3505_v35 = vpop.xlane.xlu0 %3504  ;;  %v3536_v36 = vsel %vm1529_vm4, %v5467_v30, 0.0 }
 0x6c9   :  { %5476 = vpow2.f32 %v3525_v31  ;;  %v3515_v37 = vsub.f32 %v3483_v3, %v3505_v35  ;;  %3537 = vadd.xlane.f32.xlu1 %v3536_v36  ;;  %v3533_v38 = vsel %vm1529_vm4, %v5469_v33, 0.0 }
 0x6ca   :  { %v3531_v39 = vmul.f32 1.442695, %v3516_v34  ;;  %3534 = vadd.xlane.f32.xlu0 %v3533_v38 }
 0x6cb   :  { %v3529_v40 = vmul.f32 1.442695, %v3515_v37 }
 0x6cc   :  { %5478 = vpow2.f32 %v3531_v39 }
 0x6cd   :  { %5480 = vpow2.f32 %v3529_v40 }
 0x6ce   :  { %v5471_v41 = vpop.eup %5470 }
 0x6cf   :  { %v5473_v42 = vpop.eup %5472  ;;  %v3542_v46 = vsel %vm1529_vm4, %v5471_v41, 0.0 }
 0x6d0   :  { %3543 = vadd.xlane.f32.xlu1 %v3542_v46  ;;  %v3539_v47 = vsel %vm1529_vm4, %v5473_v42, 0.0 }
 0x6d1   :  { %3540 = vadd.xlane.f32.xlu0 %v3539_v47 }
 0x6d2   :  { %v5475_v48 = vpop.eup %5474 }
 0x6d3   :  { %v5477_v49 = vpop.eup %5476  ;;  %v3548_v50 = vsel %vm1529_vm4, %v5475_v48, 0.0 }
 0x6d4   :  { %3549 = vadd.xlane.f32.xlu1 %v3548_v50  ;;  %v3545_v52 = vsel %vm1529_vm4, %v5477_v49, 0.0 }
 0x6d5   :  { %3546 = vadd.xlane.f32.xlu0 %v3545_v52 }
 0x6d6   :  { %v5479_v54 = vpop.eup %5478 }
 0x6d7   :  { %v5481_v55 = vpop.eup %5480  ;;  %v3554_v56 = vsel %vm1529_vm4, %v5479_v54, 0.0 }
 0x6d8   :  { %3555 = vadd.xlane.f32.xlu1 %v3554_v56  ;;  %v3551_v57 = vsel %vm1529_vm4, %v5481_v55, 0.0 }
 0x6d9   :  { %3552 = vadd.xlane.f32.xlu0 %v3551_v57 }
 0x6ef   :  { %1944 = vrot.lane.b32.xlu0 %v6202_v9, %s5538_s1 }
 0x756   :  { %v3538_v58 = vpop.xlane.xlu1 %3537 }
 0x757   :  { %5482 = vrcp.f32 %v3538_v58  ;;  %v3535_v61 = vpop.xlane.xlu0 %3534 }
 0x758   :  { %5484 = vrcp.f32 %v3535_v61 }
 0x75d   :  { %v3544_v63 = vpop.xlane.xlu1 %3543 }
 0x75e   :  { %5486 = vrcp.f32 %v3544_v63  ;;  %v3541_v43 = vpop.xlane.xlu0 %3540 }
 0x75f   :  { %5488 = vrcp.f32 %v3541_v43 }
 0x761   :  { %v5483_v60 = vpop.eup %5482  ;;  %v3550_v0 = vpop.xlane.xlu1 %3549 }
 0x762   :  { %v5485_v1 = vpop.eup %5484  ;;  %5490 = vrcp.f32 %v3550_v0  ;;  %v3547_v2 = vpop.xlane.xlu0 %3546  ;;  %v3566_v45 = vmul.f32 %v5483_v60, %v5467_v30 }
 0x763   :  { %5492 = vrcp.f32 %v3547_v2  ;;  %v3565_v3 = vmul.f32 %v5485_v1, %v5469_v33 }
 0x765   :  { %v3556_v4 = vpop.xlane.xlu1 %3555  ;;  %5050 = vmatprep.mubr.msk.f32.mxu0 %vm1529_vm4, %v3565_v3 }
 0x766   :  { %5494 = vrcp.f32 %v3556_v4  ;;  %5051 = vmatmul.mubr.msk.f32.vlgmr.msra.gmra.mrb[36].mxu0 %vm1529_vm4, %v3566_v45  ;;  %v3553_v9 = vpop.xlane.xlu0 %3552 }
 0x767   :  { %5382 = vmatpush3.bf16.msra.mxu0 %v6269_v22  ;;  %5496 = vrcp.f32 %v3553_v9 }
 0x768   :  { %v5487_v13 = vpop.eup %5486 }
 0x769   :  { %v5489_v14 = vpop.eup %5488  ;;  %v3568_v16 = vmul.f32 %v5487_v13, %v5471_v41 }
 0x76a   :  { %v3567_v15 = vmul.f32 %v5489_v14, %v5473_v42  ;;  %v1945_v33 = vpop.permute.xlu0 %1944 }
 0x76b   :  { %v1966_v47 = vsel %vm1158_vm1, %v6196_v5, %v1945_v33 }
 0x76c   :  { %v5491_v17 = vpop.eup %5490  ;;  %5057 = vmatprep.mubr.msk.f32.mxu1 %vm1529_vm4, %v3567_v15 }
 0x76d   :  { %v5493_v18 = vpop.eup %5492  ;;  %5058 = vmatmul.mubr.msk.f32.vlgmr.msra.gmra.mrb[36].mxu1 %vm1529_vm4, %v3568_v16  ;;  %v3570_v20 = vmul.f32 %v5491_v17, %v5475_v48 }
 0x76e   :  { %5386 = vmatpush3.bf16.msra.mxu1 %v6276_v29  ;;  %v3569_v19 = vmul.f32 %v5493_v18, %v5477_v49 }
 0x770   :  { %v5495_v62 = vpop.eup %5494  ;;  %5064 = vmatprep.mubr.msk.f32.mxu0 %vm1529_vm4, %v3569_v19 }
 0x771   :  { %v5497_v21 = vpop.eup %5496  ;;  %5065 = vmatmul.mubr.msk.f32.vlgmr.msra.gmra.mrb[38].mxu0 %vm1529_vm4, %v3570_v20  ;;  %v3572_v23 = vmul.f32 %v5495_v62, %v5479_v54  ;;  %v4456_v62 = vld [vmem:[%s6467_s12 + $0x20] sm:$0xff] }
 0x772   :  { %v3571_v22 = vmul.f32 %v5497_v21, %v5481_v55  ;;  %v4457_v21 = vld [vmem:[%s6467_s12 + $0x28] sm:$0xff] }
 0x774   :  { %5071 = vmatprep.mubr.msk.f32.mxu1 %vm1529_vm4, %v3571_v22  ;;  %v5387_v22 = vpack.c.bf16 %v4457_v21, %v4456_v62  ;;  %v4464_v62 = vld [vmem:[%s6468_s13] ss:$0 sm:$0xff] }
 0x775   :  { %5072 = vmatmul.mubr.msk.f32.vlgmr.msra.gmra.mrb[38].mxu1 %vm1529_vm4, %v3572_v23  ;;  %v4458_v23 = vld [vmem:[%s6467_s12 + $0x30] sm:$0xff] }
 0x776   :  { %5388 = vmatprep.subr.bf16.mxu0 %v5387_v22 }
 0x777   :  { %5390 = vmatpush3.bf16.msra.mxu0 %v5387_v22 }
 0x839   :  { %v5052_v25 = vpop.f32.mrb[36].mxu0 }
 0x83a   :  { %v3645_v26 = vpop.f32.mrb[37].mxu0 }
 0x840   :  { %v5059_v27 = vpop.f32.mrb[36].mxu1 }
 0x841   :  { %3901 = vrot.lane.b32.xlu1 %v5059_v27, %s5538_s1  ;;  %v3726_v29 = vpop.f32.mrb[37].mxu1  ;;  %v2019_v27 = vld [vmem:[%s6467_s12] sm:$0xff] }
 0x842   :  { %3899 = vrot.lane.b32.xlu0 %v3726_v29, %s5538_s1  ;;  %v2020_v29 = vld [vmem:[%s6467_s12 + $0x8] sm:$0xff] }
 0x844   :  { %v5066_v28 = vpop.f32.mrb[38].mxu0 }
 0x845   :  { %3909 = vrot.lane.b32.xlu1 %v5066_v28, %s5539_s9  ;;  %v3807_v24 = vpop.f32.mrb[39].mxu0  ;;  %v5395_v28 = vpack.c.bf16 %v2020_v29, %v2019_v27 }
 0x848   :  { %v5073_v30 = vpop.f32.mrb[38].mxu1 }
 0x849   :  { %3917 = vrot.lane.b32.xlu1 %v5073_v30, %s5540_s21  ;;  %v3888_v31 = vpop.f32.mrb[39].mxu1 }
 0x84a   :  { %3915 = vrot.lane.b32.xlu0 %v3888_v31, %s5540_s21 }
 0x84d   :  { %3907 = vrot.lane.b32.xlu1 %v3807_v24, %s5539_s9 }
 0x84e   :  { %1952 = vrot.lane.b32.xlu0 %v6204_v10, %s5539_s9 }
 0x851   :  { %1946 = vrot.lane.b32.xlu1 %v6198_v7, %s5538_s1 }
 0x852   :  { %1960 = vrot.lane.b32.xlu0 %v6211_v11, %s5540_s21 }
 0x855   :  { %1954 = vrot.lane.b32.xlu1 %v6200_v8, %s5539_s9 }
 0x859   :  { %1962 = vrot.lane.b32.xlu1 %v6206_v12, %s5540_s21 }
 0x8b3   :  { %v3902_v32 = vpop.permute.xlu1 %3901 }
 0x8b4   :  { %v3900_v35 = vpop.permute.xlu0 %3899  ;;  %v3922_v36 = vsel %vm1158_vm1, %v5052_v25, %v3902_v32  ;;  %v4459_v25 = vld [vmem:[%s6467_s12 + $0x38] sm:$0xff] }
 0x8b5   :  { %v3921_v11 = vsel %vm1158_vm1, %v3645_v26, %v3900_v35  ;;  %v5391_v26 = vpack.c.bf16 %v4459_v25, %v4458_v23 }
 0x8b7   :  { %v3910_v34 = vpop.permute.xlu1 %3909  ;;  %5392 = vmatprep.subr.bf16.mxu0 %v5391_v26 }
 0x8b8   :  { %v3924_v37 = vsel %vm1529_vm4, %v3922_v36, %v3910_v34  ;;  %5394 = vmatpush3.bf16.msra.mxu0 %v5391_v26 }
 0x8b9   :  { %5396 = vmatprep.subr.bf16.mxu0 %v5395_v28 }
 0x8bb   :  { %v3918_v38 = vpop.permute.xlu1 %3917 }
 0x8bc   :  { %v3926_v10 = vsel %vm1970_vm8, %v3924_v37, %v3918_v38  ;;  %v3916_v39 = vpop.permute.xlu0 %3915 }
 0x8bd   :  { %v3928_v7 = vadd.f32 %v3926_v10, %v6036_v6 }
 0x8bf   :  { %v3908_v8 = vpop.permute.xlu1 %3907  ;;  %v3932_v12 = vsel %vm76_vm0, %v3928_v7, 0.0 }
 0x8c0   :  { %v3923_v40 = vsel %vm1529_vm4, %v3921_v11, %v3908_v8  ;;  %3933 = vadd.xlane.f32.xlu1 %v3932_v12  ;;  %v1953_v41 = vpop.permute.xlu0 %1952  ;;  %v4454_v11 = vld [vmem:[%s6465_s10 + $0x1] ss:$0 sm:$0xff] }
 0x8c1   :  { %v3925_v42 = vsel %vm1970_vm8, %v3923_v40, %v3916_v39  ;;  %v1968_v49 = vsel %vm1529_vm4, %v1966_v47, %v1953_v41 }
 0x8c2   :  { %v3927_v46 = vadd.f32 %v3925_v42, %v6004_v53  ;;  %v4455_v42 = vld [vmem:[%s6466_s11 + $0x1] ss:$0 sm:$0xff] }
 0x8c3   :  { %v1947_v48 = vpop.permute.xlu1 %1946 }
 0x8c4   :  { %v1961_v6 = vpop.permute.xlu0 %1960  ;;  %v3929_v50 = vsel %vm76_vm0, %v3927_v46, 0.0  ;;  %v1967_v53 = vsel %vm1158_vm1, %v6194_v59, %v1947_v48 }
 0x8c5   :  { %v1971_v52 = vsel %vm1970_vm8, %v1968_v49, %v1961_v6  ;;  %3930 = vadd.xlane.f32.xlu0 %v3929_v50  ;;  %v4326_v49 = vld [vmem:[%s6465_s10] ss:$0 sm:$0xff]  ;;  %s5514_s10 = scalar_lea.vmem %s4254_s26, 256 }
 0x8c6   :  { %v1973_v54 = vadd.f32 %v1971_v52, %v5680_v44  ;;  %v2021_v52 = vld [vmem:[%s6467_s12 + $0x10] sm:$0xff]  ;;  %p5515_p0 = scmp.ne.s32.totalorder %s4254_s26, %s5514_s10  ;;  %p5520_p2 = scmp.lt.s32.totalorder %s5514_s10, %s5514_s10 }
 0x8c7   :  { %v1955_v55 = vpop.permute.xlu1 %1954 }
 0x8c8   :  { %v1975_v56 = vsel %vm76_vm0, %v1973_v54, 0.0  ;;  %v1969_v5 = vsel %vm1529_vm4, %v1967_v53, %v1955_v55  ;;  %v4327_v55 = vld [vmem:[%s6466_s11] ss:$0 sm:$0xff]  ;;  %p5521_p3 = por %p5520_p2, %p5519_p1 }
 0x8c9   :  { %1976 = vadd.xlane.f32.xlu0 %v1975_v56  ;;  %v5510_v56 = vld [vmem:[%s6474_s23 + $0x10] sm:$0xff] }
 0x8ca   :  { %p5522_p4 = pnand %p5521_p3, %p5515_p0 }
 0x8cb   :  { %v1963_v57 = vpop.permute.xlu1 %1962 }
 0x8cc   :  { %v1972_v58 = vsel %vm1970_vm8, %v1969_v5, %v1963_v57  ;;  %v5511_v57 = vld [vmem:[%s6474_s23 + $0x18] sm:$0xff] }
 0x8cd   :  { %v1974_v61 = vadd.f32 %v1972_v58, %v5698_v51 }
 0x8cf   :  { %v1978_v63 = vsel %vm76_vm0, %v1974_v61, 0.0 }
 0x8d0   :  { %1979 = vadd.xlane.f32.xlu0 %v1978_v63 }
 0x94d   :  { %v3934_v43 = vpop.xlane.xlu1 %3933 }
 0x94e   :  { %v3936_v60 = vmul.f32 0.03125, %v3934_v43 }
 0x950   :  { %v3938_v44 = vsub.f32 %v3928_v7, %v3936_v60  ;;  %v5512_v60 = vld [vmem:[%s6474_s23] sm:$0xff] }
 0x952   :  { %v3931_v0 = vpop.xlane.xlu0 %3930  ;;  %v3940_v1 = vmul.f32 %v3938_v44, %v3938_v44 }
 0x953   :  { %v3935_v2 = vmul.f32 0.03125, %v3931_v0 }
 0x954   :  { %v3944_v3 = vsel %vm76_vm0, %v3940_v1, 0.0 }
 0x955   :  { %v3937_v45 = vsub.f32 %v3927_v46, %v3935_v2  ;;  %3945 = vadd.xlane.f32.xlu1 %v3944_v3  ;;  %v5513_v3 = vld [vmem:[%s6474_s23 + $0x8] sm:$0xff] }
 0x956   :  { %v1977_v59 = vpop.xlane.xlu0 %1976 }
 0x957   :  { %v1981_v4 = vmul.f32 0.03125, %v1977_v59  ;;  %v3939_v9 = vmul.f32 %v3937_v45, %v3937_v45  ;;  %v63_v59 = vld [vmem:[%s6469_s14] sm:$0xff] }
 0x959   :  { %v1983_v13 = vsub.f32 %v1973_v54, %v1981_v4  ;;  %v3941_v14 = vsel %vm76_vm0, %v3939_v9, 0.0  ;;  %v2022_v54 = vld [vmem:[%s6467_s12 + $0x18] sm:$0xff]  ;;  %v64_v4 = vld [vmem:[%s6469_s14 + $0x8] sm:$0xff] }
 0x95a   :  { %3942 = vadd.xlane.f32.xlu0 %v3941_v14  ;;  %v5403_v9 = vpack.c.bf16 %v64_v4, %v63_v59  ;;  %v66_v14 = vld [vmem:[%s6469_s14 + $0x18] sm:$0xff] }
 0x95b   :  { %v1985_v51 = vmul.f32 %v1983_v13, %v1983_v13 }
 0x95c   :  { %5404 = vmatprep.subr.bf16.mxu1 %v5403_v9 }
 0x95d   :  { %v1980_v15 = vpop.xlane.xlu0 %1979  ;;  %v1987_v16 = vsel %vm76_vm0, %v1985_v51, 0.0  ;;  %5406 = vmatpush3.bf16.msra.mxu1 %v5403_v9 }
 0x95e   :  { %v1982_v17 = vmul.f32 0.03125, %v1980_v15  ;;  %1988 = vadd.xlane.f32.xlu0 %v1987_v16  ;;  %v67_v15 = vld [vmem:[%s6469_s14 + $0x20] sm:$0xff]  ;;  %v68_v16 = vld [vmem:[%s6469_s14 + $0x28] sm:$0xff] }
 0x960   :  { %v6354_v18 = vsub.f32 %v1974_v61, %v1982_v17  ;;  %v5399_v61 = vpack.c.bf16 %v2022_v54, %v2021_v52  ;;  %v5411_v17 = vpack.c.bf16 %v68_v16, %v67_v15 }
 0x962   :  { %v1986_v19 = vmul.f32 %v6354_v18, %v6354_v18 }
 0x964   :  { %v1990_v20 = vsel %vm76_vm0, %v1986_v19, 0.0  ;;  %v70_v19 = vld [vmem:[%s6469_s14 + $0x38] sm:$0xff] }
 0x965   :  { %1991 = vadd.xlane.f32.xlu1 %v1990_v20 }
 0x9e2   :  { %v3946_v24 = vpop.xlane.xlu1 %3945 }
 0x9e3   :  { %v3948_v30 = vmul.f32 0.03125, %v3946_v24 }
 0x9e5   :  { %v3950_v31 = vadd.f32 1e-05, %v3948_v30 }
 0x9e7   :  { %5498 = vrsqrt.f32 %v3950_v31  ;;  %v3943_v32 = vpop.xlane.xlu0 %3942 }
 0x9e8   :  { %v3947_v33 = vmul.f32 0.03125, %v3943_v32 }
 0x9ea   :  { %v3949_v34 = vadd.f32 1e-05, %v3947_v33 }
 0x9eb   :  { %v1989_v35 = vpop.xlane.xlu0 %1988 }
 0x9ec   :  { %5500 = vrsqrt.f32 %v3949_v34  ;;  %v1993_v36 = vmul.f32 0.03125, %v1989_v35  ;;  %v4465_v35 = vld [vmem:[%s6470_s15] ss:$0 sm:$0xff] }
 0x9ee   :  { %v1995_v37 = vadd.f32 1e-05, %v1993_v36 }
 0x9f0   :  { %5502 = vrsqrt.f32 %v1995_v37 }
 0x9f1   :  { %v5499_v38 = vpop.eup %5498 }
 0x9f2   :  { %v3954_v10 = vmul.f32 %v5499_v38, %v3938_v44  ;;  %v1992_v39 = vpop.xlane.xlu1 %1991 }
 0x9f3   :  { %v1994_v7 = vmul.f32 0.03125, %v1992_v39 }
 0x9f4   :  { %v3962_v40 = vmul.f32 %v4454_v11, %v3954_v10 }
 0x9f5   :  { %v1996_v8 = vadd.f32 1e-05, %v1994_v7 }
 0x9f6   :  { %v5501_v12 = vpop.eup %5500  ;;  %v3970_v48 = vadd.f32 %v4455_v42, %v3962_v40 }
 0x9f7   :  { %v3953_v41 = vmul.f32 %v5501_v12, %v3937_v45  ;;  %5504 = vrsqrt.f32 %v1996_v8 }
 0x9f8   :  { %v3972_v58 = vadd.f32 %v5511_v57, %v3970_v48 }
 0x9f9   :  { %v3961_v46 = vmul.f32 %v4454_v11, %v3953_v41 }
 0x9fa   :  { %v5503_v47 = vpop.eup %5502 }
 0x9fb   :  { %v1999_v6 = vmul.f32 %v5503_v47, %v1983_v13  ;;  %v3969_v50 = vadd.f32 %v4455_v42, %v3961_v46  ;;  %v65_v13 = vld [vmem:[%s6469_s14 + $0x10] sm:$0xff] }
 0x9fc   :  { %v5407_v51 = vpack.c.bf16 %v66_v14, %v65_v13 }
 0x9fd   :  { %v3971_v53 = vadd.f32 %v5510_v56, %v3969_v50  ;;  %v2007_v5 = vmul.f32 %v4326_v49, %v1999_v6 }
 0x9fe   :  { %5408 = vmatprep.subr.bf16.mxu1 %v5407_v51 }
 0x9ff   :  { %5082 = vmatprep.mubr.msk.f32.mxu0 %vm76_vm0, %v3971_v53  ;;  %v2015_v63 = vadd.f32 %v4327_v55, %v2007_v5  ;;  %5410 = vmatpush3.bf16.msra.mxu1 %v5407_v51 }
 0xa00   :  { %5083 = vmatmul.mubr.msk.f32.vlgmr.msra.gmra.mrb[40].mxu0 %vm76_vm0, %v3972_v58  ;;  %5412 = vmatprep.subr.bf16.mxu1 %v5411_v17 }
 0xa01   :  { %v5505_v43 = vpop.eup %5504  ;;  %5398 = vmatpush3.bf16.msra.mxu0 %v5395_v28  ;;  %v2017_v44 = vadd.f32 %v5512_v60, %v2015_v63 }
 0xa02   :  { %v2000_v0 = vmul.f32 %v5505_v43, %v6354_v18  ;;  %5400 = vmatprep.subr.bf16.mxu0 %v5399_v61  ;;  %v69_v18 = vld [vmem:[%s6469_s14 + $0x30] sm:$0xff] }
 0xa03   :  { %5093 = vmatprep.mubr.msk.f32.mxu0 %vm76_vm0, %v2017_v44  ;;  %5414 = vmatpush3.bf16.msra.mxu1 %v5411_v17  ;;  %v5415_v20 = vpack.c.bf16 %v70_v19, %v69_v18 }
 0xa04   :  { %v2008_v1 = vmul.f32 %v4326_v49, %v2000_v0 }
 0xa05   :  { %5402 = vmatpush3.bf16.msra.mxu0 %v5399_v61  ;;  %5416 = vmatprep.subr.bf16.mxu1 %v5415_v20 }
 0xa06   :  { %v2016_v2 = vadd.f32 %v4327_v55, %v2008_v1 }
 0xa07   :  { %5418 = vmatpush3.bf16.msra.mxu1 %v5415_v20 }
 0xa08   :  { %v2018_v45 = vadd.f32 %v5513_v3, %v2016_v2 }
 0xa0a   :  { %5094 = vmatmul.mubr.msk.f32.vlgmr.msra.gmra.mrb[40].mxu0 %vm76_vm0, %v2018_v45 }
 0xadd   :  { %v5095_v21 = vpop.f32.mrb[40].mxu0 }
 0xade   :  { %v4147_v22 = vadd.f32 %v5095_v21, %v4464_v62  ;;  %v4131_v23 = vpop.f32.mrb[41].mxu0 }
 0xadf   :  { %v4146_v25 = vadd.f32 %v4464_v62, %v4131_v23 }
 0xae0   :  { %v4151_v26 = vmul.f32 0.70710677, %v4147_v22  ;;  %v4149_v32 = vmul.f32 0.5, %v4147_v22 }
 0xae1   :  { %v4150_v27 = vmul.f32 0.70710677, %v4146_v25  ;;  %v4148_v30 = vmul.f32 0.5, %v4146_v25 }
 0xae2   :  { %5506 = verf.f32 %v4151_v26 }
 0xae3   :  { %5508 = verf.f32 %v4150_v27 }
 0xaec   :  { %v5507_v29 = vpop.eup %5506 }
 0xaed   :  { %v5509_v28 = vpop.eup %5508  ;;  %v4155_v24 = vadd.f32 1.0, %v5507_v29 }
 0xaee   :  { %v4154_v31 = vadd.f32 1.0, %v5509_v28 }
 0xaef   :  { %v4157_v34 = vmul.f32 %v4155_v24, %v4149_v32 }
 0xaf0   :  { %v4156_v33 = vmul.f32 %v4154_v31, %v4148_v30 }
 0xaf2   :  { %5112 = vmatprep.mubr.msk.f32.mxu1 %vm4164_vm9, %v4156_v33 }
 0xaf3   :  { %5113 = vmatmul.mubr.msk.f32.vlgmr.msra.gmra.mrb[40].mxu1 %vm4164_vm9, %v4157_v34 }
 0xbc6   :  { %v5114_v36 = vpop.f32.mrb[40].mxu1 }
 0xbc7   :  { %v4243_v37 = vadd.f32 %v5114_v36, %v4465_v35  ;;  %v4237_v38 = vpop.f32.mrb[41].mxu1 }
 0xbc8   :  { %v4238_v10 = vadd.f32 %v4465_v35, %v4237_v38 }
 0xbc9   :  { %4247 = vst.msk [vmem:[#allocation2 + $0x8] sm:$0xff] %vm4164_vm9, %v4243_v37 }
 0xbca   :  { %4246 = vst.msk [vmem:[#allocation2] sm:$0xff] %vm4164_vm9, %v4238_v10 }
 0xbcb   :  { %5525 = shalt.err (!%p5522_p4)
}
 0xbcc   :  { %s5526_s15 = scalar_lea.hbm %s6471_s16, 256 }
 0xbcd   :  { %p5527_p5 = scmp.ne.s32.totalorder %s6471_s16, %s5526_s15  ;;  %p5530_p6 = scmp.lt.u32.totalorder %s5526_s15, %s6471_s16 }
 0xbcf   :  { %p5532_p7 = pnand %p5530_p6, %p5527_p5 }
 0xbd1   :  { %5535 = shalt.err (!%p5532_p7)
}
 0xbd2   :  { %s5542_s7 = smov 128  }
 0xbd3   :  { %4259 = dma.vmem_to_hbm [thread:$0]  %s4254_s26, 256, %s6471_s16, [#allocation3], %s5542_s7, %s5542_s7, %s5538_s1  }
 0xbd4   :  { %5536 = dma.done.wait [#allocation3], 256  }
 0xbd5   :  { %5537 = vsyncadd [#allocation3], 4294967040 }
 0xbd6   :  { %4263 = vsyncpa [#allocation3], 1 }

</bundles_post_ra>
